<compile_context>
chip_gen: v7x
topology: tpu7x:2x2x1
jax: 0.10.0
libtpu: 0.0.40
codegen_flags: <defaults>
</compile_context>

<pallas_src>
import jax
import jax.numpy as jnp
import numpy as np
from jax.experimental import pallas as pl
from jax.experimental.pallas import tpu as pltpu

N, H, W = 1, 7, 7
HW = H * W
C_IN, C_MID, C_OUT = 1632, 128, 32
EPS = 1e-5
KC = 2                 # grid chunks for the 1x1 contraction (1632 = 2 * 816)
CK = C_IN // KC        # 816 (multiple of 8 -> valid sublane block)
NTAP = 9
LANE = 128             # lane-group stride for the tap-stacked layout


def _build_shift_stack() -> np.ndarray:
    """s_big[t*LANE + p, q] = 1 iff input pixel p feeds output pixel q for 3x3 tap t (pad=1).

    Rows [t*LANE+HW, (t+1)*LANE) are zero so junk lanes of the repacked operand
    never contribute to the output.
    """
    s = np.zeros((NTAP * LANE, HW), np.float32)
    for kh in range(3):
        for kw in range(3):
            t = kh * 3 + kw
            dh, dw = kh - 1, kw - 1
            for h in range(H):
                for w in range(W):
                    hh, ww = h + dh, w + dw
                    if 0 <= hh < H and 0 <= ww < W:
                        s[t * LANE + hh * W + ww, h * W + w] = 1.0
    return s


def fused_kernel(x_ref, w1_ref, gamma_ref, beta_ref, w2s_ref, sbig_ref,
                 out_ref, acc_ref, pw_ref):
    k = pl.program_id(0)

    @pl.when(k == 0)
    def _init():
        acc_ref[...] = jnp.zeros_like(acc_ref)

    # ---- ReLU + this K-chunk of the 1x1 conv: bf16 MXU operands, f32 accumulation ----
    xk = jnp.maximum(x_ref[...], 0.0).astype(jnp.bfloat16)              # [CK, HW]
    acc_ref[...] += jnp.dot(w1_ref[0], xk,
                            preferred_element_type=jnp.float32)         # [C_MID, HW]

    @pl.when(k == pl.num_programs(0) - 1)
    def _finalize():
        # ---- BatchNorm2d, training-mode batch stats (biased variance), f32 ----
        y = acc_ref[...]                                                 # [C_MID, HW]
        mean = jnp.mean(y, axis=1, keepdims=True)
        var = jnp.mean((y - mean) ** 2, axis=1, keepdims=True)
        z = (y - mean) * jax.lax.rsqrt(var + EPS) * gamma_ref[...] + beta_ref[...]
        z = jnp.maximum(z, 0.0).astype(jnp.bfloat16)                     # [C_MID, HW]

        # ---- 3x3 conv stage 1: all 9 taps' channel contraction, ONE MXU push ----
        p = jnp.dot(w2s_ref[...], z,
                    preferred_element_type=jnp.float32)                  # [9*C_OUT, HW]
        pb = p.astype(jnp.bfloat16)

        # ---- Repack [9*C_OUT, HW] -> [C_OUT, 9*LANE] at 128-aligned lane groups ----
        pw_ref[...] = jnp.zeros_like(pw_ref)      # pad lanes must be finite (S rows are 0)
        for t in range(NTAP):                     # static unroll, aligned lane offsets
            pw_ref[:, t * LANE:t * LANE + HW] = pb[t * C_OUT:(t + 1) * C_OUT, :]

        # ---- 3x3 conv stage 2: ONE deep-K matmul against the 0/1 shift stack ----
        out_ref[...] = jnp.dot(pw_ref[...], sbig_ref[...],
                               preferred_element_type=jnp.float32)       # [C_OUT, HW]


def prepare_params(w1, gamma, beta, w2):
    """One-time weight layout transforms (hoisted out of the per-call path)."""
    # 1x1 conv weights, chunked along C_IN for the K-split grid: [KC, C_MID, CK]
    w1_3d = (w1.reshape(C_MID, C_IN)
               .reshape(C_MID, KC, CK)
               .transpose(1, 0, 2)
               .astype(jnp.bfloat16))
    # 3x3 weights stacked tap-major along rows: [(kh*3+kw)*32 + o, c]
    w2_stack = (jnp.transpose(w2, (2, 3, 0, 1))
                  .reshape(NTAP * C_OUT, C_MID)
                  .astype(jnp.bfloat16))                                  # [288, 128]
    s_big = jnp.asarray(_build_shift_stack(), dtype=jnp.bfloat16)        # [1152, 49]
    return (w1_3d,
            gamma.reshape(C_MID, 1).astype(jnp.float32),
            beta.reshape(C_MID, 1).astype(jnp.float32),
            w2_stack,
            s_big)


@jax.jit
def forward(x_nchw, w1_3d, gamma_col, beta_col, w2_stack, s_big):
    # NCHW with N=1 -> channels-major [C_IN, HW] is a pure (free) reshape.
    x_cm = x_nchw.reshape(C_IN, HW)

    grid_spec = pltpu.PrefetchScalarGridSpec(
        num_scalar_prefetch=0,
        grid=(KC,),
        in_specs=[
            pl.BlockSpec((CK, HW), lambda k: (k, 0)),                 # x chunk (f32)
            pl.BlockSpec((1, C_MID, CK), lambda k: (k, 0, 0)),        # w1 chunk (bf16)
            pl.BlockSpec((C_MID, 1), lambda k: (0, 0)),               # gamma
            pl.BlockSpec((C_MID, 1), lambda k: (0, 0)),               # beta
            pl.BlockSpec((NTAP * C_OUT, C_MID), lambda k: (0, 0)),    # W2 stack (bf16)
            pl.BlockSpec((NTAP * LANE, HW), lambda k: (0, 0)),        # shift stack (bf16)
        ],
        out_specs=pl.BlockSpec((C_OUT, HW), lambda k: (0, 0)),
        scratch_shapes=[
            pltpu.VMEM((C_MID, HW), jnp.float32),             # 1x1-conv accumulator
            pltpu.VMEM((C_OUT, NTAP * LANE), jnp.bfloat16),   # repacked tap operand
        ],
    )

    flops = (2 * C_MID * C_IN * HW
             + 2 * NTAP * C_OUT * C_MID * HW
             + 2 * C_OUT * NTAP * LANE * HW)
    bytes_accessed = (C_IN * HW * 4 + C_MID * C_IN * 2 + 2 * C_MID * 4
                      + NTAP * C_OUT * C_MID * 2 + NTAP * LANE * HW * 2
                      + C_OUT * HW * 4)

    out_cm = pl.pallas_call(
        fused_kernel,
        out_shape=jax.ShapeDtypeStruct((C_OUT, HW), jnp.float32),
        grid_spec=grid_spec,
        compiler_params=pltpu.CompilerParams(dimension_semantics=("arbitrary",)),
        cost_estimate=pl.CostEstimate(flops=flops, transcendentals=C_MID,
                                      bytes_accessed=bytes_accessed),
    )(x_cm, w1_3d, gamma_col, beta_col, w2_stack, s_big)

    # [C_OUT, HW] -> NCHW, again a pure reshape.
    return out_cm.reshape(N, C_OUT, H, W)


def reference(x, w1, gamma, beta, w2):
    """Pure-JAX f32 reference (same semantics) used as a correctness check."""
    hi = jax.lax.Precision.HIGHEST
    x = jnp.maximum(x, 0.0)
    y = jax.lax.conv_general_dilated(x, w1, (1, 1), "VALID",
                                     dimension_numbers=("NCHW", "OIHW", "NCHW"),
                                     precision=hi)
    mean = jnp.mean(y, axis=(0, 2, 3), keepdims=True)
    var = jnp.mean((y - mean) ** 2, axis=(0, 2, 3), keepdims=True)
    z = (y - mean) * jax.lax.rsqrt(var + EPS)
    z = z * gamma.reshape(1, -1, 1, 1) + beta.reshape(1, -1, 1, 1)
    z = jnp.maximum(z, 0.0)
    return jax.lax.conv_general_dilated(z, w2, (1, 1), ((1, 1), (1, 1)),
                                        dimension_numbers=("NCHW", "OIHW", "NCHW"),
                                        precision=hi)


if __name__ == "__main__":
    key = jax.random.PRNGKey(0)
    kx, kw1, kw2, kg, kb = jax.random.split(key, 5)

    # deterministic inputs at the module-implied shapes
    x = jax.random.normal(kx, (N, C_IN, H, W), jnp.float32)               # like x644
    w1 = jax.random.normal(kw1, (C_MID, C_IN, 1, 1), jnp.float32) * 0.02
    w2 = jax.random.normal(kw2, (C_OUT, C_MID, 3, 3), jnp.float32) * 0.02
    gamma = 1.0 + 0.1 * jax.random.normal(kg, (C_MID,), jnp.float32)
    beta = 0.1 * jax.random.normal(kb, (C_MID,), jnp.float32)

    params = prepare_params(w1, gamma, beta, w2)                          # hoisted, one-time
    out = jax.block_until_ready(forward(x, *params))
    ref = jax.block_until_ready(reference(x, w1, gamma, beta, w2))

    assert out.shape == (N, C_OUT, H, W), out.shape
    # bf16 MXU operands (f32 accumulation, f32 BN math) -> compare at 2e-2.
    np.testing.assert_allclose(np.asarray(out), np.asarray(ref), rtol=2e-2, atol=2e-2)
    print("KERNEL_OK")
</pallas_src>

<mosaic_0001>
module attributes {stable_mosaic.version = 11 : i64} {
  func.func @fused_kernel(%arg0: i32, %arg1: memref<816x49xf32, #tpu.memory_space<vmem>>, %arg2: memref<1x128x816xbf16, #tpu.memory_space<vmem>>, %arg3: memref<128x1xf32, #tpu.memory_space<vmem>>, %arg4: memref<128x1xf32, #tpu.memory_space<vmem>>, %arg5: memref<288x128xbf16, #tpu.memory_space<vmem>>, %arg6: memref<1152x49xbf16, #tpu.memory_space<vmem>>, %arg7: memref<32x49xf32, #tpu.memory_space<vmem>>, %arg8: memref<128x49xf32, #tpu.memory_space<vmem>>, %arg9: memref<32x1152xbf16, #tpu.memory_space<vmem>>) attributes {dimension_semantics = [#tpu.dimension_semantics<arbitrary>], iteration_bounds = array<i64: 2>, scalar_prefetch = 0 : i64, scratch_operands = 2 : i64, tpu.core_type = #tpu.core_type<tc>, window_params = [{transform_indices = @transform_0, window_bounds = array<i64: 816, 49>}, {transform_indices = @transform_1, window_bounds = array<i64: 1, 128, 816>}, {pipeline_mode = #tpu.pipeline_mode<synchronous>, transform_indices = @transform_2, window_bounds = array<i64: 128, 1>}, {pipeline_mode = #tpu.pipeline_mode<synchronous>, transform_indices = @transform_3, window_bounds = array<i64: 128, 1>}, {pipeline_mode = #tpu.pipeline_mode<synchronous>, transform_indices = @transform_4, window_bounds = array<i64: 288, 128>}, {pipeline_mode = #tpu.pipeline_mode<synchronous>, transform_indices = @transform_5, window_bounds = array<i64: 1152, 49>}, {pipeline_mode = #tpu.pipeline_mode<synchronous>, transform_indices = @transform_6, window_bounds = array<i64: 32, 49>}]} {
    %c0_i32 = arith.constant 0 : i32
    %0 = arith.cmpi eq, %arg0, %c0_i32 : i32
    %1 = arith.extui %0 : i1 to i32
    %c0_i32_0 = arith.constant 0 : i32
    %2 = arith.cmpi ne, %1, %c0_i32_0 : i32
    scf.if %2 {
      %cst_11 = arith.constant 0.000000e+00 : f32
      %16 = vector.broadcast %cst_11 : f32 to vector<128x49xf32>
      %c0_12 = arith.constant 0 : index
      %c0_13 = arith.constant 0 : index
      %17 = vector.load %arg8[%c0_12, %c0_13] : memref<128x49xf32, #tpu.memory_space<vmem>>, vector<128x49xf32>
      tpu.vector_store %arg8[%c0_12, %c0_13], %16 {strides = array<i32>} : memref<128x49xf32, #tpu.memory_space<vmem>>, vector<128x49xf32>,
    } else {
    }
    %c0 = arith.constant 0 : index
    %c0_1 = arith.constant 0 : index
    %3 = vector.load %arg1[%c0, %c0_1] : memref<816x49xf32, #tpu.memory_space<vmem>>, vector<816x49xf32>
    %cst = arith.constant 0.000000e+00 : f32
    %4 = vector.broadcast %cst : f32 to vector<816x49xf32>
    %5 = arith.maximumf %3, %4 : vector<816x49xf32>
    %6 = arith.truncf %5 : vector<816x49xf32> to vector<816x49xbf16>
    %c0_2 = arith.constant 0 : index
    %c0_3 = arith.constant 0 : index
    %7 = vector.load %arg8[%c0_2, %c0_3] : memref<128x49xf32, #tpu.memory_space<vmem>>, vector<128x49xf32>
    %c0_4 = arith.constant 0 : index
    %c0_5 = arith.constant 0 : index
    %c0_6 = arith.constant 0 : index
    %8 = vector.load %arg2[%c0_4, %c0_5, %c0_6] : memref<1x128x816xbf16, #tpu.memory_space<vmem>>, vector<1x128x816xbf16>
    %9 = vector.shape_cast %8 : vector<1x128x816xbf16> to vector<128x816xbf16>
    %cst_7 = arith.constant dense<0.000000e+00> : vector<128x49xf32>
    %10 = tpu.matmul %9, %6, %cst_7 {dimension_numbers = #tpu.dot_dimension_numbers<[1], [0], [0], [1], [0, 0, 1, 1], [], []>} : vector<128x816xbf16>, vector<816x49xbf16>, vector<128x49xf32> -> vector<128x49xf32>
    %11 = arith.addf %7, %10 : vector<128x49xf32>
    %c0_8 = arith.constant 0 : index
    %c0_9 = arith.constant 0 : index
    %12 = vector.load %arg8[%c0_8, %c0_9] : memref<128x49xf32, #tpu.memory_space<vmem>>, vector<128x49xf32>
    tpu.vector_store %arg8[%c0_8, %c0_9], %11 {strides = array<i32>} : memref<128x49xf32, #tpu.memory_space<vmem>>, vector<128x49xf32>,
    %c1_i32 = arith.constant 1 : i32
    %13 = arith.cmpi eq, %arg0, %c1_i32 : i32
    %14 = arith.extui %13 : i1 to i32
    %c0_i32_10 = arith.constant 0 : i32
    %15 = arith.cmpi ne, %14, %c0_i32_10 : i32
    scf.if %15 {
      %c0_11 = arith.constant 0 : index
      %c0_12 = arith.constant 0 : index
      %16 = vector.load %arg8[%c0_11, %c0_12] : memref<128x49xf32, #tpu.memory_space<vmem>>, vector<128x49xf32>
      %cst_13 = arith.constant dense<0.000000e+00> : vector<128xf32>
      %17 = vector.multi_reduction <add>, %16, %cst_13 [1] : vector<128x49xf32> to vector<128xf32>
      %18 = vector.shape_cast %17 : vector<128xf32> to vector<128x1xf32>
      %cst_14 = arith.constant 4.900000e+01 : f32
      %19 = vector.broadcast %cst_14 : f32 to vector<128x1xf32>
      %20 = arith.divf %18, %19 : vector<128x1xf32>
      %21 = vector.broadcast %20 : vector<128x1xf32> to vector<128x49xf32>
      %22 = arith.subf %16, %21 : vector<128x49xf32>
      %23 = arith.mulf %22, %22 : vector<128x49xf32>
      %cst_15 = arith.constant dense<0.000000e+00> : vector<128xf32>
      %24 = vector.multi_reduction <add>, %23, %cst_15 [1] : vector<128x49xf32> to vector<128xf32>
      %25 = vector.shape_cast %24 : vector<128xf32> to vector<128x1xf32>
      %cst_16 = arith.constant 4.900000e+01 : f32
      %26 = vector.broadcast %cst_16 : f32 to vector<128x1xf32>
      %27 = arith.divf %25, %26 : vector<128x1xf32>
      %28 = vector.broadcast %20 : vector<128x1xf32> to vector<128x49xf32>
      %29 = arith.subf %16, %28 : vector<128x49xf32>
      %cst_17 = arith.constant 9.99999974E-6 : f32
      %30 = vector.broadcast %cst_17 : f32 to vector<128x1xf32>
      %31 = arith.addf %27, %30 : vector<128x1xf32>
      %32 = math.rsqrt %31 : vector<128x1xf32>
      %33 = vector.broadcast %32 : vector<128x1xf32> to vector<128x49xf32>
      %34 = arith.mulf %29, %33 : vector<128x49xf32>
      %c0_18 = arith.constant 0 : index
      %c0_19 = arith.constant 0 : index
      %35 = vector.load %arg3[%c0_18, %c0_19] : memref<128x1xf32, #tpu.memory_space<vmem>>, vector<128x1xf32>
      %36 = vector.broadcast %35 : vector<128x1xf32> to vector<128x49xf32>
      %37 = arith.mulf %34, %36 : vector<128x49xf32>
      %c0_20 = arith.constant 0 : index
      %c0_21 = arith.constant 0 : index
      %38 = vector.load %arg4[%c0_20, %c0_21] : memref<128x1xf32, #tpu.memory_space<vmem>>, vector<128x1xf32>
      %39 = vector.broadcast %38 : vector<128x1xf32> to vector<128x49xf32>
      %40 = arith.addf %37, %39 : vector<128x49xf32>
      %cst_22 = arith.constant 0.000000e+00 : f32
      %41 = vector.broadcast %cst_22 : f32 to vector<128x49xf32>
      %42 = arith.maximumf %40, %41 : vector<128x49xf32>
      %43 = arith.truncf %42 : vector<128x49xf32> to vector<128x49xbf16>
      %c0_23 = arith.constant 0 : index
      %c0_24 = arith.constant 0 : index
      %44 = vector.load %arg5[%c0_23, %c0_24] : memref<288x128xbf16, #tpu.memory_space<vmem>>, vector<288x128xbf16>
      %cst_25 = arith.constant dense<0.000000e+00> : vector<288x49xf32>
      %45 = tpu.matmul %44, %43, %cst_25 {dimension_numbers = #tpu.dot_dimension_numbers<[1], [0], [0], [1], [0, 0, 1, 1], [], []>} : vector<288x128xbf16>, vector<128x49xbf16>, vector<288x49xf32> -> vector<288x49xf32>
      %46 = arith.truncf %45 : vector<288x49xf32> to vector<288x49xbf16>
      %cst_26 = arith.constant 0.000000e+00 : bf16
      %47 = vector.broadcast %cst_26 : bf16 to vector<32x1152xbf16>
      %c0_27 = arith.constant 0 : index
      %c0_28 = arith.constant 0 : index
      %48 = vector.load %arg9[%c0_27, %c0_28] : memref<32x1152xbf16, #tpu.memory_space<vmem>>, vector<32x1152xbf16>
      tpu.vector_store %arg9[%c0_27, %c0_28], %47 {strides = array<i32>} : memref<32x1152xbf16, #tpu.memory_space<vmem>>, vector<32x1152xbf16>,
      %49 = vector.extract_strided_slice %46 {offsets = [0, 0], sizes = [32, 49], strides = [1, 1]} : vector<288x49xbf16> to vector<32x49xbf16>
      %c0_29 = arith.constant 0 : index
      %c0_30 = arith.constant 0 : index
      %50 = vector.load %arg9[%c0_29, %c0_30] : memref<32x1152xbf16, #tpu.memory_space<vmem>>, vector<32x49xbf16>
      tpu.vector_store %arg9[%c0_29, %c0_30], %49 {strides = array<i32>} : memref<32x1152xbf16, #tpu.memory_space<vmem>>, vector<32x49xbf16>,
      %51 = vector.extract_strided_slice %46 {offsets = [32, 0], sizes = [32, 49], strides = [1, 1]} : vector<288x49xbf16> to vector<32x49xbf16>
      %c0_31 = arith.constant 0 : index
      %c128 = arith.constant 128 : index
      %52 = vector.load %arg9[%c0_31, %c128] : memref<32x1152xbf16, #tpu.memory_space<vmem>>, vector<32x49xbf16>
      tpu.vector_store %arg9[%c0_31, %c128], %51 {strides = array<i32>} : memref<32x1152xbf16, #tpu.memory_space<vmem>>, vector<32x49xbf16>,
      %53 = vector.extract_strided_slice %46 {offsets = [64, 0], sizes = [32, 49], strides = [1, 1]} : vector<288x49xbf16> to vector<32x49xbf16>
      %c0_32 = arith.constant 0 : index
      %c256 = arith.constant 256 : index
      %54 = vector.load %arg9[%c0_32, %c256] : memref<32x1152xbf16, #tpu.memory_space<vmem>>, vector<32x49xbf16>
      tpu.vector_store %arg9[%c0_32, %c256], %53 {strides = array<i32>} : memref<32x1152xbf16, #tpu.memory_space<vmem>>, vector<32x49xbf16>,
      %55 = vector.extract_strided_slice %46 {offsets = [96, 0], sizes = [32, 49], strides = [1, 1]} : vector<288x49xbf16> to vector<32x49xbf16>
      %c0_33 = arith.constant 0 : index
      %c384 = arith.constant 384 : index
      %56 = vector.load %arg9[%c0_33, %c384] : memref<32x1152xbf16, #tpu.memory_space<vmem>>, vector<32x49xbf16>
      tpu.vector_store %arg9[%c0_33, %c384], %55 {strides = array<i32>} : memref<32x1152xbf16, #tpu.memory_space<vmem>>, vector<32x49xbf16>,
      %57 = vector.extract_strided_slice %46 {offsets = [128, 0], sizes = [32, 49], strides = [1, 1]} : vector<288x49xbf16> to vector<32x49xbf16>
      %c0_34 = arith.constant 0 : index
      %c512 = arith.constant 512 : index
      %58 = vector.load %arg9[%c0_34, %c512] : memref<32x1152xbf16, #tpu.memory_space<vmem>>, vector<32x49xbf16>
      tpu.vector_store %arg9[%c0_34, %c512], %57 {strides = array<i32>} : memref<32x1152xbf16, #tpu.memory_space<vmem>>, vector<32x49xbf16>,
      %59 = vector.extract_strided_slice %46 {offsets = [160, 0], sizes = [32, 49], strides = [1, 1]} : vector<288x49xbf16> to vector<32x49xbf16>
      %c0_35 = arith.constant 0 : index
      %c640 = arith.constant 640 : index
      %60 = vector.load %arg9[%c0_35, %c640] : memref<32x1152xbf16, #tpu.memory_space<vmem>>, vector<32x49xbf16>
      tpu.vector_store %arg9[%c0_35, %c640], %59 {strides = array<i32>} : memref<32x1152xbf16, #tpu.memory_space<vmem>>, vector<32x49xbf16>,
      %61 = vector.extract_strided_slice %46 {offsets = [192, 0], sizes = [32, 49], strides = [1, 1]} : vector<288x49xbf16> to vector<32x49xbf16>
      %c0_36 = arith.constant 0 : index
      %c768 = arith.constant 768 : index
      %62 = vector.load %arg9[%c0_36, %c768] : memref<32x1152xbf16, #tpu.memory_space<vmem>>, vector<32x49xbf16>
      tpu.vector_store %arg9[%c0_36, %c768], %61 {strides = array<i32>} : memref<32x1152xbf16, #tpu.memory_space<vmem>>, vector<32x49xbf16>,
      %63 = vector.extract_strided_slice %46 {offsets = [224, 0], sizes = [32, 49], strides = [1, 1]} : vector<288x49xbf16> to vector<32x49xbf16>
      %c0_37 = arith.constant 0 : index
      %c896 = arith.constant 896 : index
      %64 = vector.load %arg9[%c0_37, %c896] : memref<32x1152xbf16, #tpu.memory_space<vmem>>, vector<32x49xbf16>
      tpu.vector_store %arg9[%c0_37, %c896], %63 {strides = array<i32>} : memref<32x1152xbf16, #tpu.memory_space<vmem>>, vector<32x49xbf16>,
      %65 = vector.extract_strided_slice %46 {offsets = [256, 0], sizes = [32, 49], strides = [1, 1]} : vector<288x49xbf16> to vector<32x49xbf16>
      %c0_38 = arith.constant 0 : index
      %c1024 = arith.constant 1024 : index
      %66 = vector.load %arg9[%c0_38, %c1024] : memref<32x1152xbf16, #tpu.memory_space<vmem>>, vector<32x49xbf16>
      tpu.vector_store %arg9[%c0_38, %c1024], %65 {strides = array<i32>} : memref<32x1152xbf16, #tpu.memory_space<vmem>>, vector<32x49xbf16>,
      %c0_39 = arith.constant 0 : index
      %c0_40 = arith.constant 0 : index
      %67 = vector.load %arg9[%c0_39, %c0_40] : memref<32x1152xbf16, #tpu.memory_space<vmem>>, vector<32x1152xbf16>
      %c0_41 = arith.constant 0 : index
      %c0_42 = arith.constant 0 : index
      %68 = vector.load %arg6[%c0_41, %c0_42] : memref<1152x49xbf16, #tpu.memory_space<vmem>>, vector<1152x49xbf16>
      %cst_43 = arith.constant dense<0.000000e+00> : vector<32x49xf32>
      %69 = tpu.matmul %67, %68, %cst_43 {dimension_numbers = #tpu.dot_dimension_numbers<[1], [0], [0], [1], [0, 0, 1, 1], [], []>} : vector<32x1152xbf16>, vector<1152x49xbf16>, vector<32x49xf32> -> vector<32x49xf32>
      %c0_44 = arith.constant 0 : index
      %c0_45 = arith.constant 0 : index
      %70 = vector.load %arg7[%c0_44, %c0_45] : memref<32x49xf32, #tpu.memory_space<vmem>>, vector<32x49xf32>
      tpu.vector_store %arg7[%c0_44, %c0_45], %69 {strides = array<i32>} : memref<32x49xf32, #tpu.memory_space<vmem>>, vector<32x49xf32>,
    } else {
    }
    return
  }
  func.func @transform_0(%arg0: i32) -> (i32, i32) {
    %c0_i32 = arith.constant 0 : i32
    %c0_i32_0 = arith.constant 0 : i32
    return %arg0, %c0_i32 : i32, i32
  }
  func.func @transform_1(%arg0: i32) -> (i32, i32, i32) {
    %c0_i32 = arith.constant 0 : i32
    %c0_i32_0 = arith.constant 0 : i32
    %c0_i32_1 = arith.constant 0 : i32
    return %arg0, %c0_i32, %c0_i32_0 : i32, i32, i32
  }
  func.func @transform_2(%arg0: i32) -> (i32, i32) {
    %c0_i32 = arith.constant 0 : i32
    %c0_i32_0 = arith.constant 0 : i32
    %c0_i32_1 = arith.constant 0 : i32
    return %c0_i32, %c0_i32_0 : i32, i32
  }
  func.func @transform_3(%arg0: i32) -> (i32, i32) {
    %c0_i32 = arith.constant 0 : i32
    %c0_i32_0 = arith.constant 0 : i32
    %c0_i32_1 = arith.constant 0 : i32
    return %c0_i32, %c0_i32_0 : i32, i32
  }
  func.func @transform_4(%arg0: i32) -> (i32, i32) {
    %c0_i32 = arith.constant 0 : i32
    %c0_i32_0 = arith.constant 0 : i32
    %c0_i32_1 = arith.constant 0 : i32
    return %c0_i32, %c0_i32_0 : i32, i32
  }
  func.func @transform_5(%arg0: i32) -> (i32, i32) {
    %c0_i32 = arith.constant 0 : i32
    %c0_i32_0 = arith.constant 0 : i32
    %c0_i32_1 = arith.constant 0 : i32
    return %c0_i32, %c0_i32_0 : i32, i32
  }
  func.func @transform_6(%arg0: i32) -> (i32, i32) {
    %c0_i32 = arith.constant 0 : i32
    %c0_i32_0 = arith.constant 0 : i32
    %c0_i32_1 = arith.constant 0 : i32
    return %c0_i32, %c0_i32_0 : i32, i32
  }
}

</mosaic_0001>

<bundles_post_ra>
// kernel: forward.1
= control target key start
LH: loop header
LB: loop body
LE: loop exit
PB: predicated region body
PF: predicated region fallthrough
CT: control target
= control target key end

     0   :  { %s3962_s21 = smov 0   ;;  %s4830_s0 = inlined_call_operand.vmem [shape: f32[1632,49], index: 0, kind: input, shape index: {}]   ;;  %s4831_s1 = inlined_call_operand.vmem [shape: bf16[2,128,816], index: 1, kind: input, shape index: {}]   ;;  %s4832_s2 = inlined_call_operand.vmem [shape: f32[128,1], index: 2, kind: input, shape index: {}]   ;;  %s4833_s3 = inlined_call_operand.vmem [shape: f32[128,1], index: 3, kind: input, shape index: {}]   ;;  %s4834_s4 = inlined_call_operand.vmem [shape: bf16[288,128], index: 4, kind: input, shape index: {}]   ;;  %s4835_s5 = inlined_call_operand.vmem [shape: bf16[1152,49], index: 5, kind: input, shape index: {}]   ;;  %s4836_s6 = inlined_call_operand.vmem [shape: f32[32,49], index: 6, kind: output, shape index: {}]  }
   0x1 LB: > { %s3968_s22 = sadd.s32 4294967295, %s3923_s21   ;;  %p3080_p0 = scmp.ge.s32.totalorder %s3923_s21, 1  ;;  %s3923_s21 = sphi %s3962_s21, %s16_s21  }
   0x2   : > { %p218_p1 = scmp.lt.s32.totalorder %s3923_s21, 3 }
   0x4   : > { %p219_p2 = pnand %p3080_p0, %p218_p1 }
   0x5   : > { %s248_s23 = smul.u32 (!%p219_p2), 102, %s3968_s22  ;;  %p254_p3 = scmp.lt.s32.totalorder (!%p219_p2), %s3968_s22, 1 }
   0x6   : > { %222 = sbr.rel (%p219_p2) target bundleno = 1326 (0x52e), region = 44  ;;  %p3083_p5 = scmp.ne.s32.totalorder (!%p219_p2), %s3968_s22, 0 }
   0x7   : > { %p249_p4 = scmp.lt.s32.totalorder (!%p219_p2), %s248_s23, 203 }
   0xd   : > { %s255_s24 = scalar_select %p254_p3, %s3968_s22, 1 }
   0xe   : > { %s4838_s23 = smov (!%p249_p4, %s248_s23), 203  ;;  %263 = sbr.rel (%p3083_p5) target bundleno = 24 (0x18), region = 48 }
   0xf   : > { %s3702_s25 = smul.u32 448, %s255_s24  ;;  %s3081_s26 = sshll.u32 %s4838_s23, 3  ;;  %vm264_vm0 = vcmask (!%p3083_p5), 400384   ;;  %v3925_v0 = vmov (!%p3083_p5), 0.0  }
  0x10   : > { %s3978_s29 = scalar_lea.vmem %s4830_s0, %s3081_s26  ;;  %265 = vst.msk [vmem:[#allocation2] sm:$0xff] (!%p3083_p5), %vm264_vm0, %v3925_v0  ;;  %266 = vst.msk [vmem:[#allocation2 + $0x8] sm:$0xff] (!%p3083_p5), %vm264_vm0, %v3925_v0 }
  0x11   : > { %s3983_s8 = scalar_lea.vmem %s4831_s1, %s3702_s25  ;;  %267 = vst.msk [vmem:[#allocation2 + $0x10] sm:$0xff] (!%p3083_p5), %vm264_vm0, %v3925_v0  ;;  %268 = vst.msk [vmem:[#allocation2 + $0x18] sm:$0xff] (!%p3083_p5), %vm264_vm0, %v3925_v0 }
  0x12   : > { %269 = vst.msk [vmem:[#allocation2 + $0x20] sm:$0xff] (!%p3083_p5), %vm264_vm0, %v3925_v0  ;;  %270 = vst.msk [vmem:[#allocation2 + $0x28] sm:$0xff] (!%p3083_p5), %vm264_vm0, %v3925_v0 }
  0x13   : > { %271 = vst.msk [vmem:[#allocation2 + $0x30] sm:$0xff] (!%p3083_p5), %vm264_vm0, %v3925_v0  ;;  %272 = vst.msk [vmem:[#allocation2 + $0x38] sm:$0xff] (!%p3083_p5), %vm264_vm0, %v3925_v0 }
  0x14   : > { %273 = vst.msk [vmem:[#allocation2 + $0x40] sm:$0xff] (!%p3083_p5), %vm264_vm0, %v3925_v0  ;;  %274 = vst.msk [vmem:[#allocation2 + $0x48] sm:$0xff] (!%p3083_p5), %vm264_vm0, %v3925_v0 }
  0x15   : > { %275 = vst.msk [vmem:[#allocation2 + $0x50] sm:$0xff] %vm264_vm0, %v3925_v0  ;;  %276 = vst.msk [vmem:[#allocation2 + $0x58] sm:$0xff] %vm264_vm0, %v3925_v0 }
  0x16   : > { %277 = vst.msk [vmem:[#allocation2 + $0x60] sm:$0xff] %vm264_vm0, %v3925_v0  ;;  %278 = vst.msk [vmem:[#allocation2 + $0x68] sm:$0xff] %vm264_vm0, %v3925_v0 }
  0x17   : > { %279 = vst.msk [vmem:[#allocation2 + $0x70] sm:$0xff] %vm264_vm0, %v3925_v0  ;;  %280 = vst.msk [vmem:[#allocation2 + $0x78] sm:$0xff] %vm264_vm0, %v3925_v0 }
  0x18 PF: > { %v297_v1 = vld [vmem:[%s3978_s29 + $0x80] sm:$0xff]  ;;  %v298_v2 = vld [vmem:[%s3978_s29 + $0x88] sm:$0xff]  ;;  %v299_v15 = vld [vmem:[%s3978_s29 + $0x90] sm:$0xff]  ;;  %vm896_vm1 = vcmask 392192   ;;  %vm1325_vm2 = vcmask 400384   ;;  %p3148_p6 = scmp.ne.s32.totalorder %s3968_s22, 1 }
  0x19   : > { %v329_v3 = vld [vmem:[%s3978_s29 + $0x180] sm:$0xff]  ;;  %v399_v4 = vmax.f32 %v297_v1, 0.0  ;;  %v400_v5 = vmax.f32 %v298_v2, 0.0  ;;  %v330_v6 = vld [vmem:[%s3978_s29 + $0x188] sm:$0xff]  ;;  %v300_v19 = vld [vmem:[%s3978_s29 + $0x98] sm:$0xff]  ;;  %v401_v20 = vmax.f32 %v299_v15, 0.0 }
  0x1a   : > { %v431_v7 = vmax.f32 %v329_v3, 0.0  ;;  %v281_v8 = vld [vmem:[%s3978_s29] sm:$0xff]  ;;  %v282_v9 = vld [vmem:[%s3978_s29 + $0x8] sm:$0xff]  ;;  %v432_v10 = vmax.f32 %v330_v6, 0.0  ;;  %v331_v21 = vld [vmem:[%s3978_s29 + $0x190] sm:$0xff]  ;;  %v402_v25 = vmax.f32 %v300_v19, 0.0 }
  0x1b   : > { %v383_v11 = vmax.f32 %v281_v8, 0.0  ;;  %v384_v12 = vmax.f32 %v282_v9, 0.0  ;;  %v313_v13 = vld [vmem:[%s3978_s29 + $0x100] sm:$0xff]  ;;  %v314_v14 = vld [vmem:[%s3978_s29 + $0x108] sm:$0xff]  ;;  %v493_v16 = vpack.c.bf16 %v400_v5, %v399_v4  ;;  %v332_v22 = vld [vmem:[%s3978_s29 + $0x198] sm:$0xff]  ;;  %v433_v26 = vmax.f32 %v331_v21, 0.0 }
  0x1c   : > { %v415_v17 = vmax.f32 %v313_v13, 0.0  ;;  %v416_v18 = vmax.f32 %v314_v14, 0.0  ;;  %v509_v23 = vpack.c.bf16 %v432_v10, %v431_v7  ;;  %v283_v27 = vld [vmem:[%s3978_s29 + $0x10] sm:$0xff]  ;;  %v284_v28 = vld [vmem:[%s3978_s29 + $0x18] sm:$0xff]  ;;  %v434_v31 = vmax.f32 %v332_v22, 0.0  ;;  %v301_v35 = vld [vmem:[%s3978_s29 + $0xa0] sm:$0xff] }
  0x1d   : > { %v485_v24 = vpack.c.bf16 %v384_v12, %v383_v11  ;;  %v315_v29 = vld [vmem:[%s3978_s29 + $0x110] sm:$0xff]  ;;  %3241 = vmatprep.subr.bf16.mxu0 %v493_v16  ;;  %v385_v32 = vmax.f32 %v283_v27, 0.0  ;;  %v386_v33 = vmax.f32 %v284_v28, 0.0  ;;  %v316_v34 = vld [vmem:[%s3978_s29 + $0x118] sm:$0xff]  ;;  %v302_v36 = vld [vmem:[%s3978_s29 + $0xa8] sm:$0xff]  ;;  %v494_v37 = vpack.c.bf16 %v402_v25, %v401_v20 }
  0x1e   : > { %v501_v30 = vpack.c.bf16 %v416_v18, %v415_v17  ;;  %3305 = vmatprep.subr.bf16.mxu1 %v509_v23  ;;  %v417_v38 = vmax.f32 %v315_v29, 0.0  ;;  %v418_v39 = vmax.f32 %v316_v34, 0.0  ;;  %v403_v40 = vmax.f32 %v301_v35, 0.0  ;;  %v333_v41 = vld [vmem:[%s3978_s29 + $0x1a0] sm:$0xff]  ;;  %v334_v42 = vld [vmem:[%s3978_s29 + $0x1a8] sm:$0xff]  ;;  %v303_v55 = vld [vmem:[%s3978_s29 + $0xb0] sm:$0xff] }
  0x1f   : > { %3242 = vmatpush3.bf16.msra.mxu0 %v485_v24  ;;  %v285_v43 = vld [vmem:[%s3978_s29 + $0x20] sm:$0xff]  ;;  %v510_v44 = vpack.c.bf16 %v434_v31, %v433_v26  ;;  %v486_v45 = vpack.c.bf16 %v386_v33, %v385_v32  ;;  %v404_v46 = vmax.f32 %v302_v36, 0.0  ;;  %v435_v47 = vmax.f32 %v333_v41, 0.0  ;;  %v286_v48 = vld [vmem:[%s3978_s29 + $0x28] sm:$0xff]  ;;  %v304_v56 = vld [vmem:[%s3978_s29 + $0xb8] sm:$0xff] }
  0x20   : > { %3306 = vmatpush3.bf16.msra.mxu1 %v501_v30  ;;  %v317_v49 = vld [vmem:[%s3978_s29 + $0x120] sm:$0xff]  ;;  %v318_v50 = vld [vmem:[%s3978_s29 + $0x128] sm:$0xff]  ;;  %3243 = vmatprep.subr.bf16.mxu0 %v494_v37  ;;  %v502_v51 = vpack.c.bf16 %v418_v39, %v417_v38  ;;  %v436_v52 = vmax.f32 %v334_v42, 0.0  ;;  %v387_v53 = vmax.f32 %v285_v43, 0.0  ;;  %v388_v54 = vmax.f32 %v286_v48, 0.0  ;;  %v335_v57 = vld [vmem:[%s3978_s29 + $0x1b0] sm:$0xff] }
  0x21   : > { %3307 = vmatprep.subr.bf16.mxu1 %v510_v44  ;;  %v495_v58 = vpack.c.bf16 %v404_v46, %v403_v40  ;;  %v419_v59 = vmax.f32 %v317_v49, 0.0  ;;  %v420_v60 = vmax.f32 %v318_v50, 0.0  ;;  %v405_v61 = vmax.f32 %v303_v55, 0.0  ;;  %v336_v62 = vld [vmem:[%s3978_s29 + $0x1b8] sm:$0xff]  ;;  %v287_v63 = vld [vmem:[%s3978_s29 + $0x30] sm:$0xff]  ;;  %v305_v7 = vld [vmem:[%s3978_s29 + $0xc0] sm:$0xff] }
  0x22   : > { %v288_v0 = vld [vmem:[%s3978_s29 + $0x38] sm:$0xff]  ;;  %v511_v1 = vpack.c.bf16 %v436_v52, %v435_v47  ;;  %v487_v2 = vpack.c.bf16 %v388_v54, %v387_v53  ;;  %v406_v3 = vmax.f32 %v304_v56, 0.0  ;;  %v437_v4 = vmax.f32 %v335_v57, 0.0  ;;  %v319_v5 = vld [vmem:[%s3978_s29 + $0x130] sm:$0xff]  ;;  %v306_v12 = vld [vmem:[%s3978_s29 + $0xc8] sm:$0xff] }
  0x23   : > { %3244 = vmatpush3.bf16.msra.mxu0 %v486_v45  ;;  %v320_v6 = vld [vmem:[%s3978_s29 + $0x138] sm:$0xff]  ;;  %v503_v8 = vpack.c.bf16 %v420_v60, %v419_v59  ;;  %v438_v9 = vmax.f32 %v336_v62, 0.0  ;;  %v389_v10 = vmax.f32 %v287_v63, 0.0  ;;  %v390_v11 = vmax.f32 %v288_v0, 0.0  ;;  %v337_v13 = vld [vmem:[%s3978_s29 + $0x1c0] sm:$0xff]  ;;  %v338_v14 = vld [vmem:[%s3978_s29 + $0x1c8] sm:$0xff] }
  0x24   : > { %3308 = vmatpush3.bf16.msra.mxu1 %v502_v51  ;;  %3245 = vmatprep.subr.bf16.mxu0 %v495_v58  ;;  %v496_v15 = vpack.c.bf16 %v406_v3, %v405_v61  ;;  %v421_v16 = vmax.f32 %v319_v5, 0.0  ;;  %v422_v17 = vmax.f32 %v320_v6, 0.0  ;;  %v407_v18 = vmax.f32 %v305_v7, 0.0  ;;  %v289_v19 = vld [vmem:[%s3978_s29 + $0x40] sm:$0xff]  ;;  %v290_v20 = vld [vmem:[%s3978_s29 + $0x48] sm:$0xff]  ;;  %v307_v27 = vld [vmem:[%s3978_s29 + $0xd0] sm:$0xff] }
  0x25   : > { %3309 = vmatprep.subr.bf16.mxu1 %v511_v1  ;;  %v321_v21 = vld [vmem:[%s3978_s29 + $0x140] sm:$0xff]  ;;  %v512_v22 = vpack.c.bf16 %v438_v9, %v437_v4  ;;  %v488_v23 = vpack.c.bf16 %v390_v11, %v389_v10  ;;  %v408_v24 = vmax.f32 %v306_v12, 0.0  ;;  %v439_v25 = vmax.f32 %v337_v13, 0.0  ;;  %v322_v26 = vld [vmem:[%s3978_s29 + $0x148] sm:$0xff]  ;;  %v308_v28 = vld [vmem:[%s3978_s29 + $0xd8] sm:$0xff] }
  0x26   : > { %v504_v29 = vpack.c.bf16 %v422_v17, %v421_v16  ;;  %v440_v30 = vmax.f32 %v338_v14, 0.0  ;;  %v391_v31 = vmax.f32 %v289_v19, 0.0  ;;  %v392_v32 = vmax.f32 %v290_v20, 0.0  ;;  %v339_v33 = vld [vmem:[%s3978_s29 + $0x1d0] sm:$0xff]  ;;  %v340_v34 = vld [vmem:[%s3978_s29 + $0x1d8] sm:$0xff]  ;;  %v309_v46 = vld [vmem:[%s3978_s29 + $0xe0] sm:$0xff] }
  0x27   : > { %3246 = vmatpush3.bf16.msra.mxu0 %v487_v2  ;;  %v497_v35 = vpack.c.bf16 %v408_v24, %v407_v18  ;;  %v423_v36 = vmax.f32 %v321_v21, 0.0  ;;  %v424_v37 = vmax.f32 %v322_v26, 0.0  ;;  %v409_v38 = vmax.f32 %v307_v27, 0.0  ;;  %v291_v39 = vld [vmem:[%s3978_s29 + $0x50] sm:$0xff]  ;;  %v292_v40 = vld [vmem:[%s3978_s29 + $0x58] sm:$0xff]  ;;  %v310_v47 = vld [vmem:[%s3978_s29 + $0xe8] sm:$0xff] }
  0x28   : > { %3310 = vmatpush3.bf16.msra.mxu1 %v503_v8  ;;  %3247 = vmatprep.subr.bf16.mxu0 %v496_v15  ;;  %v323_v41 = vld [vmem:[%s3978_s29 + $0x150] sm:$0xff]  ;;  %v513_v42 = vpack.c.bf16 %v440_v30, %v439_v25  ;;  %v410_v43 = vmax.f32 %v308_v28, 0.0  ;;  %v441_v44 = vmax.f32 %v339_v33, 0.0  ;;  %v324_v45 = vld [vmem:[%s3978_s29 + $0x158] sm:$0xff]  ;;  %v489_v48 = vpack.c.bf16 %v392_v32, %v391_v31  ;;  %v341_v50 = vld [vmem:[%s3978_s29 + $0x1e0] sm:$0xff] }
  0x29   : > { %3311 = vmatprep.subr.bf16.mxu1 %v512_v22  ;;  %v442_v49 = vmax.f32 %v340_v34, 0.0  ;;  %v342_v51 = vld [vmem:[%s3978_s29 + $0x1e8] sm:$0xff]  ;;  %v505_v52 = vpack.c.bf16 %v424_v37, %v423_v36  ;;  %v393_v54 = vmax.f32 %v291_v39, 0.0  ;;  %v394_v55 = vmax.f32 %v292_v40, 0.0  ;;  %v293_v56 = vld [vmem:[%s3978_s29 + $0x60] sm:$0xff]  ;;  %v311_v3 = vld [vmem:[%s3978_s29 + $0xf0] sm:$0xff] }
  0x2a   : > { %v498_v53 = vpack.c.bf16 %v410_v43, %v409_v38  ;;  %v294_v57 = vld [vmem:[%s3978_s29 + $0x68] sm:$0xff]  ;;  %v425_v58 = vmax.f32 %v323_v41, 0.0  ;;  %v426_v59 = vmax.f32 %v324_v45, 0.0  ;;  %v411_v60 = vmax.f32 %v309_v46, 0.0  ;;  %v325_v62 = vld [vmem:[%s3978_s29 + $0x160] sm:$0xff]  ;;  %v312_v4 = vld [vmem:[%s3978_s29 + $0xf8] sm:$0xff] }
  0x2b   : > { %3248 = vmatpush3.bf16.msra.mxu0 %v488_v23  ;;  %v412_v61 = vmax.f32 %v310_v47, 0.0  ;;  %v326_v63 = vld [vmem:[%s3978_s29 + $0x168] sm:$0xff]  ;;  %v514_v0 = vpack.c.bf16 %v442_v49, %v441_v44  ;;  %v443_v1 = vmax.f32 %v341_v50, 0.0  ;;  %v444_v2 = vmax.f32 %v342_v51, 0.0  ;;  %v343_v5 = vld [vmem:[%s3978_s29 + $0x1f0] sm:$0xff]  ;;  %v344_v8 = vld [vmem:[%s3978_s29 + $0x1f8] sm:$0xff] }
  0x2c   : > { %3312 = vmatpush3.bf16.msra.mxu1 %v504_v29  ;;  %3249 = vmatprep.subr.bf16.mxu0 %v497_v35  ;;  %v395_v6 = vmax.f32 %v293_v56, 0.0  ;;  %v396_v7 = vmax.f32 %v294_v57, 0.0  ;;  %v490_v9 = vpack.c.bf16 %v394_v55, %v393_v54  ;;  %v427_v10 = vmax.f32 %v325_v62, 0.0  ;;  %v295_v12 = vld [vmem:[%s3978_s29 + $0x70] sm:$0xff]  ;;  %v296_v13 = vld [vmem:[%s3978_s29 + $0x78] sm:$0xff]  ;;  %v361_v25 = vld [vmem:[%s3978_s29 + $0x280] sm:$0xff] }
  0x2d   : > { %3313 = vmatprep.subr.bf16.mxu1 %v513_v42  ;;  %v428_v11 = vmax.f32 %v326_v63, 0.0  ;;  %v3715_v14 = vld [vmem:[%s3983_s8 + $0x4] ss:$28 sps:$4 sm:$0xff]   ;;  %v506_v15 = vpack.c.bf16 %v426_v59, %v425_v58  ;;  %v499_v16 = vpack.c.bf16 %v412_v61, %v411_v60  ;;  %v413_v17 = vmax.f32 %v311_v3, 0.0  ;;  %v327_v19 = vld [vmem:[%s3978_s29 + $0x170] sm:$0xff]  ;;  %v328_v23 = vld [vmem:[%s3978_s29 + $0x178] sm:$0xff] }
  0x2e   : > { %v414_v18 = vmax.f32 %v312_v4, 0.0  ;;  %v515_v20 = vpack.c.bf16 %v444_v2, %v443_v1  ;;  %v445_v21 = vmax.f32 %v343_v5, 0.0  ;;  %v446_v22 = vmax.f32 %v344_v8, 0.0  ;;  %953 = vmatprep.mubr.bf16.mxu0 %v3715_v14  ;;  %v3718_v24 = vld [vmem:[%s3983_s8 + $0xc] ss:$28 sps:$4 sm:$0xff]   ;;  %v345_v36 = vld [vmem:[%s3978_s29 + $0x200] sm:$0xff] }
  0x2f   : > { %3250 = vmatpush3.bf16.msra.mxu0 %v489_v48  ;;  %v491_v26 = vpack.c.bf16 %v396_v7, %v395_v6  ;;  %v362_v27 = vld [vmem:[%s3978_s29 + $0x288] sm:$0xff]  ;;  %v507_v28 = vpack.c.bf16 %v428_v11, %v427_v10  ;;  %v397_v29 = vmax.f32 %v295_v12, 0.0  ;;  %v398_v30 = vmax.f32 %v296_v13, 0.0  ;;  %1050 = vmatprep.mubr.bf16.mxu1 %v3718_v24  ;;  %v363_v39 = vld [vmem:[%s3978_s29 + $0x290] sm:$0xff]  ;;  %v364_v40 = vld [vmem:[%s3978_s29 + $0x298] sm:$0xff] }
  0x30   : > { %3314 = vmatpush3.bf16.msra.mxu1 %v505_v52  ;;  %3251 = vmatprep.subr.bf16.mxu0 %v498_v53  ;;  %v429_v31 = vmax.f32 %v327_v19, 0.0  ;;  %v500_v32 = vpack.c.bf16 %v414_v18, %v413_v17  ;;  %v430_v33 = vmax.f32 %v328_v23, 0.0  ;;  %v463_v34 = vmax.f32 %v361_v25, 0.0  ;;  %v346_v37 = vld [vmem:[%s3978_s29 + $0x208] sm:$0xff]  ;;  %v347_v46 = vld [vmem:[%s3978_s29 + $0x210] sm:$0xff]  ;;  %v348_v47 = vld [vmem:[%s3978_s29 + $0x218] sm:$0xff] }
  0x31   : > { %3315 = vmatprep.subr.bf16.mxu1 %v514_v0  ;;  %v464_v35 = vmax.f32 %v362_v27, 0.0  ;;  %v516_v38 = vpack.c.bf16 %v446_v22, %v445_v21  ;;  %v492_v41 = vpack.c.bf16 %v398_v30, %v397_v29  ;;  %v447_v42 = vmax.f32 %v345_v36, 0.0  ;;  %v365_v50 = vld [vmem:[%s3978_s29 + $0x2a0] sm:$0xff]  ;;  %v366_v53 = vld [vmem:[%s3978_s29 + $0x2a8] sm:$0xff]  ;;  %v3719_v57 = vld [vmem:[%s3983_s8 + $0x3c] ss:$28 sps:$4 sm:$0xff]  }
  0x32   : > { %v448_v43 = vmax.f32 %v346_v37, 0.0  ;;  %v508_v44 = vpack.c.bf16 %v430_v33, %v429_v31  ;;  %v465_v48 = vmax.f32 %v363_v39, 0.0  ;;  %v466_v49 = vmax.f32 %v364_v40, 0.0  ;;  %v3713_v51 = vld [vmem:[%s3983_s8] ss:$28 sps:$4 sm:$0xff]   ;;  %v350_v63 = vld [vmem:[%s3978_s29 + $0x228] sm:$0xff] }
  0x33   : > { %3252 = vmatpush3.bf16.msra.mxu0 %v490_v9  ;;  %v525_v45 = vpack.c.bf16 %v464_v35, %v463_v34  ;;  %v3716_v52 = vld [vmem:[%s3983_s8 + $0x8] ss:$28 sps:$4 sm:$0xff]   ;;  %v449_v55 = vmax.f32 %v347_v46, 0.0  ;;  %v450_v56 = vmax.f32 %v348_v47, 0.0  ;;  %v467_v58 = vmax.f32 %v365_v50, 0.0  ;;  %v367_v0 = vld [vmem:[%s3978_s29 + $0x2b0] sm:$0xff] }
  0x34   : > { %3316 = vmatpush3.bf16.msra.mxu1 %v506_v15  ;;  %3253 = vmatprep.subr.bf16.mxu0 %v499_v16  ;;  %v517_v54 = vpack.c.bf16 %v448_v43, %v447_v42  ;;  %v468_v59 = vmax.f32 %v366_v53, 0.0  ;;  %v3721_v60 = vld [vmem:[%s3983_s8 + $0x44] ss:$28 sps:$4 sm:$0xff]   ;;  %v526_v61 = vpack.c.bf16 %v466_v49, %v465_v48  ;;  %v368_v1 = vld [vmem:[%s3978_s29 + $0x2b8] sm:$0xff]  ;;  %v452_v6 = vmax.f32 %v350_v63, 0.0  ;;  %v351_v10 = vld [vmem:[%s3978_s29 + $0x230] sm:$0xff] }
  0x35   : > { %3317 = vmatprep.subr.bf16.mxu1 %v515_v20  ;;  %v349_v62 = vld [vmem:[%s3978_s29 + $0x220] sm:$0xff]  ;;  %v518_v2 = vpack.c.bf16 %v450_v56, %v449_v55  ;;  %v3723_v3 = vld [vmem:[%s3983_s8 + $0x38] ss:$28 sps:$4 sm:$0xff]   ;;  %v469_v8 = vmax.f32 %v367_v0, 0.0  ;;  %v470_v9 = vmax.f32 %v368_v1, 0.0  ;;  %v370_v14 = vld [vmem:[%s3978_s29 + $0x2c8] sm:$0xff] }
  0x36   : > { %v527_v4 = vpack.c.bf16 %v468_v59, %v467_v58  ;;  %v451_v5 = vmax.f32 %v349_v62, 0.0  ;;  %v3724_v7 = vld [vmem:[%s3983_s8 + $0x40] ss:$28 sps:$4 sm:$0xff]   ;;  %v3725_v12 = vld [vmem:[%s3983_s8 + $0x74] ss:$28 sps:$4 sm:$0xff]   ;;  %v453_v17 = vmax.f32 %v351_v10, 0.0 }
  0x37   : > { %3254 = vmatpush3.bf16.msra.mxu0 %v491_v26  ;;  %v352_v11 = vld [vmem:[%s3978_s29 + $0x238] sm:$0xff]  ;;  %v369_v13 = vld [vmem:[%s3978_s29 + $0x2c0] sm:$0xff]  ;;  %v528_v19 = vpack.c.bf16 %v470_v9, %v469_v8  ;;  %v472_v21 = vmax.f32 %v370_v14, 0.0  ;;  %v354_v23 = vld [vmem:[%s3978_s29 + $0x248] sm:$0xff] }
  0x38   : > { %3318 = vmatpush3.bf16.msra.mxu1 %v507_v28  ;;  %3255 = vmatprep.subr.bf16.mxu0 %v500_v32  ;;  %v3727_v15 = vld [vmem:[%s3983_s8 + $0x7c] ss:$28 sps:$4 sm:$0xff]   ;;  %v519_v16 = vpack.c.bf16 %v452_v6, %v451_v5  ;;  %v454_v18 = vmax.f32 %v352_v11, 0.0  ;;  %v471_v20 = vmax.f32 %v369_v13, 0.0  ;;  %v353_v22 = vld [vmem:[%s3978_s29 + $0x240] sm:$0xff]  ;;  %v371_v24 = vld [vmem:[%s3978_s29 + $0x2d0] sm:$0xff] }
  0x39   : > { %3319 = vmatprep.subr.bf16.mxu1 %v516_v38  ;;  %v372_v25 = vld [vmem:[%s3978_s29 + $0x2d8] sm:$0xff]  ;;  %v3729_v26 = vld [vmem:[%s3983_s8 + $0x70] ss:$28 sps:$4 sm:$0xff]   ;;  %v455_v28 = vmax.f32 %v353_v22, 0.0  ;;  %v456_v29 = vmax.f32 %v354_v23, 0.0  ;;  %v473_v32 = vmax.f32 %v371_v24, 0.0 }
  0x3a   : > { %v520_v27 = vpack.c.bf16 %v454_v18, %v453_v17  ;;  %v3730_v30 = vld [vmem:[%s3983_s8 + $0x78] ss:$28 sps:$4 sm:$0xff]   ;;  %v529_v31 = vpack.c.bf16 %v472_v21, %v471_v20  ;;  %v474_v33 = vmax.f32 %v372_v25, 0.0  ;;  %v3731_v36 = vld [vmem:[%s3983_s8 + $0xac] ss:$28 sps:$4 sm:$0xff]   ;;  %v373_v37 = vld [vmem:[%s3978_s29 + $0x2e0] sm:$0xff] }
  0x3b   : > { %3256 = vmatpush3.bf16.msra.mxu0 %v492_v41  ;;  %v355_v34 = vld [vmem:[%s3978_s29 + $0x250] sm:$0xff]  ;;  %v356_v35 = vld [vmem:[%s3978_s29 + $0x258] sm:$0xff]  ;;  %v374_v38 = vld [vmem:[%s3978_s29 + $0x2e8] sm:$0xff]  ;;  %v521_v40 = vpack.c.bf16 %v456_v29, %v455_v28 }
  0x3c   : > { %3320 = vmatpush3.bf16.msra.mxu1 %v508_v44  ;;  %3369 = vmatprep.subr.bf16.mxu0 %v525_v45  ;;  %v3733_v39 = vld [vmem:[%s3983_s8 + $0xb4] ss:$28 sps:$4 sm:$0xff]   ;;  %v457_v41 = vmax.f32 %v355_v34, 0.0  ;;  %v458_v42 = vmax.f32 %v356_v35, 0.0  ;;  %v530_v43 = vpack.c.bf16 %v474_v33, %v473_v32  ;;  %v475_v44 = vmax.f32 %v373_v37, 0.0  ;;  %v357_v46 = vld [vmem:[%s3978_s29 + $0x260] sm:$0xff] }
  0x3d   : > { %3686 = vmatprep.subr.bf16.mxu1 %v525_v45  ;;  %v476_v45 = vmax.f32 %v374_v38, 0.0  ;;  %v358_v47 = vld [vmem:[%s3978_s29 + $0x268] sm:$0xff]  ;;  %v375_v48 = vld [vmem:[%s3978_s29 + $0x2f0] sm:$0xff]  ;;  %v376_v49 = vld [vmem:[%s3978_s29 + $0x2f8] sm:$0xff] }
  0x3e   : > { %954 = vmatmul.mubr.bf16.vlgmr.msra.gmra.mrb[0].mxu0 %v3713_v51  ;;  %v3735_v50 = vld [vmem:[%s3983_s8 + $0xa8] ss:$28 sps:$4 sm:$0xff]   ;;  %v522_v51 = vpack.c.bf16 %v458_v42, %v457_v41  ;;  %v460_v53 = vmax.f32 %v358_v47, 0.0  ;;  %v478_v58 = vmax.f32 %v376_v49, 0.0  ;;  %v359_v59 = vld [vmem:[%s3978_s29 + $0x270] sm:$0xff]  ;;  %v380_v25 = vld [vmem:[%s3978_s29 + $0x318] sm:$0xff] }
  0x3f   : > { %1051 = vmatmul.mubr.bf16.vlgmr.msra.gmra.mrb[0].mxu1 %v3716_v52  ;;  %3370 = vmatpush3.bf16.msra.mxu0 %v517_v54  ;;  %v459_v52 = vmax.f32 %v357_v46, 0.0  ;;  %v3737_v55 = vld [vmem:[%s3983_s8 + $0xe4] ss:$28 sps:$4 sm:$0xff]   ;;  %v531_v56 = vpack.c.bf16 %v476_v45, %v475_v44  ;;  %v378_v62 = vld [vmem:[%s3978_s29 + $0x308] sm:$0xff]  ;;  %v461_v1 = vmax.f32 %v359_v59, 0.0  ;;  %v379_v24 = vld [vmem:[%s3978_s29 + $0x310] sm:$0xff] }
  0x40   : > { %3694 = vmatpush3.bf16.msra.mxu1 %v517_v54  ;;  %961 = vmatprep.mubr.bf16.mxu0 %v3719_v57  ;;  %v3736_v54 = vld [vmem:[%s3983_s8 + $0xb0] ss:$28 sps:$4 sm:$0xff]   ;;  %v477_v57 = vmax.f32 %v375_v48, 0.0  ;;  %v480_v5 = vmax.f32 %v378_v62, 0.0  ;;  %v3742_v9 = vld [vmem:[%s3983_s8 + $0xe8] ss:$28 sps:$4 sm:$0xff]  }
  0x41   : > { %1058 = vmatprep.mubr.bf16.mxu1 %v3721_v60  ;;  %3371 = vmatprep.subr.bf16.mxu0 %v526_v61  ;;  %v360_v60 = vld [vmem:[%s3978_s29 + $0x278] sm:$0xff]  ;;  %v3739_v63 = vld [vmem:[%s3983_s8 + $0xec] ss:$28 sps:$4 sm:$0xff]   ;;  %v523_v0 = vpack.c.bf16 %v460_v53, %v459_v52  ;;  %v3745_v11 = vld [vmem:[%s3983_s8 + $0x124] ss:$28 sps:$4 sm:$0xff]  }
  0x42   : > { %3687 = vmatprep.subr.bf16.mxu1 %v526_v61  ;;  %v377_v61 = vld [vmem:[%s3978_s29 + $0x300] sm:$0xff]  ;;  %v3743_v10 = vld [vmem:[%s3983_s8 + $0x11c] ss:$28 sps:$4 sm:$0xff]   ;;  %v3749_v14 = vld [vmem:[%s3983_s8 + $0x154] ss:$28 sps:$4 sm:$0xff]  }
  0x43   : > { %3372 = vmatpush3.bf16.msra.mxu0 %v518_v2  ;;  %v3748_v13 = vld [vmem:[%s3983_s8 + $0x120] ss:$28 sps:$4 sm:$0xff]   ;;  %v3754_v17 = vld [vmem:[%s3983_s8 + $0x158] ss:$28 sps:$4 sm:$0xff]   ;;  %v3755_v18 = vld [vmem:[%s3983_s8 + $0x18c] ss:$28 sps:$4 sm:$0xff]  }
  0x44   : > { %3695 = vmatpush3.bf16.msra.mxu1 %v518_v2  ;;  %3373 = vmatprep.subr.bf16.mxu0 %v527_v4  ;;  %v462_v2 = vmax.f32 %v360_v60, 0.0  ;;  %v3759_v20 = vld [vmem:[%s3983_s8 + $0x188] ss:$28 sps:$4 sm:$0xff]   ;;  %v3760_v21 = vld [vmem:[%s3983_s8 + $0x190] ss:$28 sps:$4 sm:$0xff]  }
  0x45   : > { %3688 = vmatprep.subr.bf16.mxu1 %v527_v4  ;;  %v479_v4 = vmax.f32 %v377_v61, 0.0  ;;  %v3763_v22 = vld [vmem:[%s3983_s8 + $0x14] ss:$28 sps:$4 sm:$0xff]   ;;  %v3766_v23 = vld [vmem:[%s3983_s8 + $0x164] ss:$28 sps:$4 sm:$0xff]  }
  0x46   : > { %962 = vmatmul.mubr.bf16.gmra.mrb[4].mxu0 %v3723_v3  ;;  %v532_v3 = vpack.c.bf16 %v478_v58, %v477_v57  ;;  %v524_v6 = vpack.c.bf16 %v462_v2, %v461_v1  ;;  %v3761_v28 = vld [vmem:[%s3983_s8 + $0x10] ss:$28 sps:$4 sm:$0xff]   ;;  %v381_v29 = vld [vmem:[%s3978_s29 + $0x320] sm:$0xff]  ;;  %v3769_v33 = vld [vmem:[%s3983_s8 + $0x19c] ss:$28 sps:$4 sm:$0xff]  }
  0x47   : > { %1059 = vmatmul.mubr.bf16.gmra.mrb[4].mxu1 %v3724_v7  ;;  %969 = vmatprep.mubr.bf16.mxu0 %v3725_v12  ;;  %v3741_v7 = vld [vmem:[%s3983_s8 + $0xe0] ss:$28 sps:$4 sm:$0xff]   ;;  %v533_v8 = vpack.c.bf16 %v480_v5, %v479_v4  ;;  %v3747_v12 = vld [vmem:[%s3983_s8 + $0x118] ss:$28 sps:$4 sm:$0xff]   ;;  %v3767_v32 = vld [vmem:[%s3983_s8 + $0x4c] ss:$28 sps:$4 sm:$0xff]  }
  0x48   : > { %1066 = vmatprep.mubr.bf16.mxu1 %v3727_v15  ;;  %3374 = vmatpush3.bf16.msra.mxu0 %v519_v16  ;;  %v3751_v15 = vld [vmem:[%s3983_s8 + $0x15c] ss:$28 sps:$4 sm:$0xff]   ;;  %v483_v35 = vmax.f32 %v381_v29, 0.0  ;;  %v3771_v38 = vld [vmem:[%s3983_s8 + $0x48] ss:$28 sps:$4 sm:$0xff]  }
  0x49   : > { %3696 = vmatpush3.bf16.msra.mxu1 %v519_v16  ;;  %3375 = vmatprep.subr.bf16.mxu0 %v528_v19  ;;  %v3753_v16 = vld [vmem:[%s3983_s8 + $0x150] ss:$28 sps:$4 sm:$0xff]   ;;  %v3775_v41 = vld [vmem:[%s3983_s8 + $0x18] ss:$28 sps:$4 sm:$0xff]   ;;  %v3776_v42 = vld [vmem:[%s3983_s8 + $0x80] ss:$28 sps:$4 sm:$0xff]  }
  0x4a   : > { %3689 = vmatprep.subr.bf16.mxu1 %v528_v19  ;;  %v3757_v19 = vld [vmem:[%s3983_s8 + $0x194] ss:$28 sps:$4 sm:$0xff]   ;;  %v3778_v44 = vld [vmem:[%s3983_s8 + $0xbc] ss:$28 sps:$4 sm:$0xff]   ;;  %v3780_v45 = vld [vmem:[%s3983_s8 + $0x88] ss:$28 sps:$4 sm:$0xff]  }
  0x4b   : > { %v3781_v46 = vld [vmem:[%s3983_s8 + $0xb8] ss:$28 sps:$4 sm:$0xff]   ;;  %v3782_v47 = vld [vmem:[%s3983_s8 + $0xc0] ss:$28 sps:$4 sm:$0xff]   ;;  %v3788_v52 = vld [vmem:[%s3983_s8 + $0x12c] ss:$28 sps:$4 sm:$0xff]  }
  0x4c   : > { %3376 = vmatpush3.bf16.msra.mxu0 %v520_v27  ;;  %v3783_v48 = vld [vmem:[%s3983_s8 + $0xf4] ss:$28 sps:$4 sm:$0xff]   ;;  %v3790_v53 = vld [vmem:[%s3983_s8 + $0x168] ss:$28 sps:$4 sm:$0xff]  }
  0x4d   : > { %3697 = vmatpush3.bf16.msra.mxu1 %v520_v27  ;;  %3377 = vmatprep.subr.bf16.mxu0 %v529_v31  ;;  %v482_v27 = vmax.f32 %v380_v25, 0.0  ;;  %v3785_v49 = vld [vmem:[%s3983_s8 + $0xf8] ss:$28 sps:$4 sm:$0xff]  }
  0x4e   : > { %970 = vmatmul.mubr.bf16.gmra.mrb[8].mxu0 %v3729_v26  ;;  %3690 = vmatprep.subr.bf16.mxu1 %v529_v31  ;;  %v481_v26 = vmax.f32 %v379_v24, 0.0  ;;  %v3764_v31 = vld [vmem:[%s3983_s8 + $0x160] ss:$28 sps:$4 sm:$0xff]  }
  0x4f   : > { %1067 = vmatmul.mubr.bf16.gmra.mrb[8].mxu1 %v3730_v30  ;;  %977 = vmatprep.mubr.bf16.mxu0 %v3731_v36  ;;  %v382_v30 = vld [vmem:[%s3978_s29 + $0x328] sm:$0xff] }
  0x50   : > { %1074 = vmatprep.mubr.bf16.mxu1 %v3733_v39  ;;  %3378 = vmatpush3.bf16.msra.mxu0 %v521_v40  ;;  %v534_v34 = vpack.c.bf16 %v482_v27, %v481_v26  ;;  %v484_v36 = vmax.f32 %v382_v30, 0.0  ;;  %v3772_v39 = vld [vmem:[%s3983_s8 + $0x198] ss:$28 sps:$4 sm:$0xff]  }
  0x51   : > { %3698 = vmatpush3.bf16.msra.mxu1 %v521_v40  ;;  %3379 = vmatprep.subr.bf16.mxu0 %v530_v43  ;;  %v3773_v40 = vld [vmem:[%s3983_s8 + $0x84] ss:$28 sps:$4 sm:$0xff]  }
  0x52   : > { %3691 = vmatprep.subr.bf16.mxu1 %v530_v43  ;;  %v535_v37 = vpack.c.bf16 %v484_v36, %v483_v35  ;;  %v3777_v43 = vld [vmem:[%s3983_s8 + $0x50] ss:$28 sps:$4 sm:$0xff]  }
  0x54   : > { %3380 = vmatpush3.bf16.msra.mxu0 %v522_v51 }
  0x55   : > { %3699 = vmatpush3.bf16.msra.mxu1 %v522_v51  ;;  %3381 = vmatprep.subr.bf16.mxu0 %v531_v56  ;;  %v3787_v51 = vld [vmem:[%s3983_s8 + $0x130] ss:$28 sps:$4 sm:$0xff]  }
  0x56   : > { %978 = vmatmul.mubr.bf16.gmra.mrb[12].mxu0 %v3735_v50  ;;  %3692 = vmatprep.subr.bf16.mxu1 %v531_v56  ;;  %v3786_v50 = vld [vmem:[%s3983_s8 + $0xf0] ss:$28 sps:$4 sm:$0xff]  }
  0x57   : > { %1075 = vmatmul.mubr.bf16.gmra.mrb[12].mxu1 %v3736_v54  ;;  %985 = vmatprep.mubr.bf16.mxu0 %v3737_v55  ;;  %v3791_v54 = vld [vmem:[%s3983_s8 + $0x128] ss:$28 sps:$4 sm:$0xff]   ;;  %v3792_v55 = vld [vmem:[%s3983_s8 + $0x1a0] ss:$28 sps:$4 sm:$0xff]  }
  0x58   : > { %1082 = vmatprep.mubr.bf16.mxu1 %v3739_v63  ;;  %3382 = vmatpush3.bf16.msra.mxu0 %v523_v0 }
  0x59   : > { %3700 = vmatpush3.bf16.msra.mxu1 %v523_v0  ;;  %3383 = vmatprep.subr.bf16.mxu0 %v532_v3 }
  0x5a   : > { %3693 = vmatprep.subr.bf16.mxu1 %v532_v3 }
  0x5c   : > { %3384 = vmatpush3.bf16.msra.mxu0 %v524_v6 }
  0x5d   : > { %3701 = vmatpush3.bf16.msra.mxu1 %v524_v6 }
  0x5e   : > { %986 = vmatmul.mubr.bf16.gmra.mrb[16].mxu0 %v3741_v7  ;;  %3592 = vmatprep.subr.bf16.mxu1 %v533_v8 }
  0x5f   : > { %1083 = vmatmul.mubr.bf16.gmra.mrb[16].mxu1 %v3742_v9  ;;  %993 = vmatprep.mubr.bf16.mxu0 %v3743_v10 }
  0x60   : > { %1090 = vmatprep.mubr.bf16.mxu1 %v3745_v11 }
  0x66   : > { %994 = vmatmul.mubr.bf16.gmra.mrb[20].mxu0 %v3747_v12 }
  0x67   : > { %1091 = vmatmul.mubr.bf16.gmra.mrb[20].mxu1 %v3748_v13  ;;  %1001 = vmatprep.mubr.bf16.mxu0 %v3749_v14 }
  0x68   : > { %1098 = vmatprep.mubr.bf16.mxu1 %v3751_v15 }
  0x6e   : > { %1002 = vmatmul.mubr.bf16.gmra.mrb[24].mxu0 %v3753_v16 }
  0x6f   : > { %1099 = vmatmul.mubr.bf16.gmra.mrb[24].mxu1 %v3754_v17  ;;  %1009 = vmatprep.mubr.bf16.mxu0 %v3755_v18 }
  0x70   : > { %1106 = vmatprep.mubr.bf16.mxu1 %v3757_v19 }
  0x76   : > { %1010 = vmatmul.mubr.bf16.gmra.mrb[28].mxu0 %v3759_v20 }
  0x77   : > { %1107 = vmatmul.mubr.bf16.gmra.mrb[28].mxu1 %v3760_v21  ;;  %1147 = vmatprep.mubr.bf16.mxu0 %v3763_v22 }
  0x78   : > { %1195 = vmatprep.mubr.bf16.mxu1 %v3766_v23 }
  0x7e   : > { %1148 = vmatmul.mubr.bf16.vlgmr.msra.gmra.mrb[32].mxu0 %v3761_v28 }
  0x7f   : > { %1196 = vmatmul.mubr.bf16.vlgmr.msra.gmra.mrb[32].mxu1 %v3764_v31  ;;  %1155 = vmatprep.mubr.bf16.mxu0 %v3767_v32 }
  0x80   : > { %3593 = vmatpush3.bf16.msra.mxu1 %v533_v8  ;;  %1203 = vmatprep.mubr.bf16.mxu1 %v3769_v33 }
  0x81   : > { %3594 = vmatprep.subr.bf16.mxu1 %v534_v34 }
  0x84   : > { %3595 = vmatpush3.bf16.msra.mxu1 %v534_v34 }
  0x85   : > { %3596 = vmatprep.subr.bf16.mxu1 %v535_v37 }
  0x86   : > { %1156 = vmatmul.mubr.bf16.gmra.mrb[36].mxu0 %v3771_v38 }
  0x87   : > { %1204 = vmatmul.mubr.bf16.gmra.mrb[36].mxu1 %v3772_v39  ;;  %1163 = vmatprep.mubr.bf16.mxu0 %v3773_v40 }
  0x88   : > { %3597 = vmatpush3.bf16.msra.mxu1 %v535_v37  ;;  %3598 = vmatprep.mubr.msk.bf16.mxu1 %vm896_vm1, %v3775_v41 }
  0x8e   : > { %1164 = vmatmul.mubr.bf16.gmra.mrb[40].mxu0 %v3776_v42 }
  0x8f   : > { %3599 = vmatmul.mubr.msk.bf16.vlgmr.msra.gmra.mrb[40].mxu1 %vm896_vm1, %v3777_v43  ;;  %1171 = vmatprep.mubr.bf16.mxu0 %v3778_v44 }
  0x90   : > { %3602 = vmatprep.mubr.msk.bf16.mxu1 %vm896_vm1, %v3780_v45 }
  0x96   : > { %1172 = vmatmul.mubr.bf16.gmra.mrb[44].mxu0 %v3781_v46 }
  0x97   : > { %3603 = vmatmul.mubr.msk.bf16.gmra.mrb[44].mxu1 %vm896_vm1, %v3782_v47  ;;  %1179 = vmatprep.mubr.bf16.mxu0 %v3783_v48 }
  0x98   : > { %3606 = vmatprep.mubr.msk.bf16.mxu1 %vm896_vm1, %v3785_v49 }
  0x9e   : > { %1180 = vmatmul.mubr.bf16.gmra.mrb[48].mxu0 %v3786_v50 }
  0x9f   : > { %3607 = vmatmul.mubr.msk.bf16.gmra.mrb[48].mxu1 %vm896_vm1, %v3787_v51  ;;  %1187 = vmatprep.mubr.bf16.mxu0 %v3788_v52 }
  0xa0   : > { %3610 = vmatprep.mubr.msk.bf16.mxu1 %vm896_vm1, %v3790_v53 }
  0xa6   : > { %1188 = vmatmul.mubr.bf16.gmra.mrb[52].mxu0 %v3791_v54 }
  0xa7   : > { %3611 = vmatmul.mubr.msk.bf16.gmra.mrb[52].mxu1 %vm896_vm1, %v3792_v55 }
 0x111   : > { %v3257_v56 = vpop.f32.mrb[0].mxu0 }
 0x112   : > { %v3321_v57 = vpop.f32.mrb[0].mxu1  ;;  %v3258_v58 = vpop.f32.mrb[1].mxu0 }
 0x113   : > { %v3259_v59 = vadd.f32 %v3258_v58, %v3257_v56  ;;  %v3322_v60 = vpop.f32.mrb[1].mxu1  ;;  %v3260_v61 = vpop.f32.mrb[2].mxu0 }
 0x114   : > { %v3323_v62 = vadd.f32 %v3322_v60, %v3321_v57  ;;  %v3324_v63 = vpop.f32.mrb[2].mxu1  ;;  %v3261_v0 = vpop.f32.mrb[3].mxu0 }
 0x115   : > { %v3262_v1 = vadd.f32 %v3261_v0, %v3260_v61  ;;  %v3325_v2 = vpop.f32.mrb[3].mxu1 }
 0x116   : > { %v4168_v3 = vadd.f32 %v3323_v62, %v3259_v59  ;;  %v3326_v4 = vadd.f32 %v3325_v2, %v3324_v63 }
 0x118   : > { %v4170_v5 = vadd.f32 %v3326_v4, %v3262_v1 }
 0x119   : > { %v3263_v6 = vpop.f32.mrb[4].mxu0 }
 0x11a   : > { %v3327_v7 = vpop.f32.mrb[4].mxu1  ;;  %v3264_v8 = vpop.f32.mrb[5].mxu0 }
 0x11b   : > { %v3265_v9 = vadd.f32 %v3264_v8, %v3263_v6  ;;  %v3328_v10 = vpop.f32.mrb[5].mxu1  ;;  %v3266_v11 = vpop.f32.mrb[6].mxu0 }
 0x11c   : > { %v3329_v12 = vadd.f32 %v3328_v10, %v3327_v7  ;;  %v3330_v13 = vpop.f32.mrb[6].mxu1  ;;  %v3267_v14 = vpop.f32.mrb[7].mxu0 }
 0x11d   : > { %v3268_v15 = vadd.f32 %v3267_v14, %v3266_v11  ;;  %v3331_v16 = vpop.f32.mrb[7].mxu1 }
 0x11e   : > { %v4172_v17 = vadd.f32 %v3329_v12, %v3265_v9  ;;  %v3332_v18 = vadd.f32 %v3331_v16, %v3330_v13 }
 0x120   : > { %v4174_v19 = vadd.f32 %v3332_v18, %v3268_v15 }
 0x121   : > { %v3269_v20 = vpop.f32.mrb[8].mxu0 }
 0x122   : > { %v3333_v21 = vpop.f32.mrb[8].mxu1  ;;  %v3270_v22 = vpop.f32.mrb[9].mxu0 }
 0x123   : > { %v3271_v23 = vadd.f32 %v3270_v22, %v3269_v20  ;;  %v3334_v24 = vpop.f32.mrb[9].mxu1  ;;  %v3272_v25 = vpop.f32.mrb[10].mxu0 }
 0x124   : > { %v3335_v26 = vadd.f32 %v3334_v24, %v3333_v21  ;;  %v3336_v27 = vpop.f32.mrb[10].mxu1  ;;  %v3273_v28 = vpop.f32.mrb[11].mxu0 }
 0x125   : > { %v3274_v29 = vadd.f32 %v3273_v28, %v3272_v25  ;;  %v3337_v30 = vpop.f32.mrb[11].mxu1 }
 0x126   : > { %v4176_v31 = vadd.f32 %v3335_v26, %v3271_v23  ;;  %v3338_v32 = vadd.f32 %v3337_v30, %v3336_v27 }
 0x128   : > { %v4178_v33 = vadd.f32 %v3338_v32, %v3274_v29 }
 0x129   : > { %v3275_v34 = vpop.f32.mrb[12].mxu0 }
 0x12a   : > { %v3339_v35 = vpop.f32.mrb[12].mxu1  ;;  %v3276_v36 = vpop.f32.mrb[13].mxu0 }
 0x12b   : > { %v3277_v37 = vadd.f32 %v3276_v36, %v3275_v34  ;;  %v3340_v38 = vpop.f32.mrb[13].mxu1  ;;  %v3278_v39 = vpop.f32.mrb[14].mxu0 }
 0x12c   : > { %v3341_v40 = vadd.f32 %v3340_v38, %v3339_v35  ;;  %v3342_v41 = vpop.f32.mrb[14].mxu1  ;;  %v3279_v42 = vpop.f32.mrb[15].mxu0 }
 0x12d   : > { %v3280_v43 = vadd.f32 %v3279_v42, %v3278_v39  ;;  %v3343_v44 = vpop.f32.mrb[15].mxu1 }
 0x12e   : > { %v4180_v45 = vadd.f32 %v3341_v40, %v3277_v37  ;;  %v3344_v46 = vadd.f32 %v3343_v44, %v3342_v41 }
 0x130   : > { %v4182_v47 = vadd.f32 %v3344_v46, %v3280_v43 }
 0x131   : > { %v3281_v48 = vpop.f32.mrb[16].mxu0 }
 0x132   : > { %v3345_v49 = vpop.f32.mrb[16].mxu1  ;;  %v3282_v50 = vpop.f32.mrb[17].mxu0 }
 0x133   : > { %v3283_v51 = vadd.f32 %v3282_v50, %v3281_v48  ;;  %v3346_v52 = vpop.f32.mrb[17].mxu1  ;;  %v3284_v53 = vpop.f32.mrb[18].mxu0 }
 0x134   : > { %v3347_v54 = vadd.f32 %v3346_v52, %v3345_v49  ;;  %v3348_v55 = vpop.f32.mrb[18].mxu1  ;;  %v3285_v56 = vpop.f32.mrb[19].mxu0 }
 0x135   : > { %v3286_v57 = vadd.f32 %v3285_v56, %v3284_v53  ;;  %v3349_v58 = vpop.f32.mrb[19].mxu1 }
 0x136   : > { %v4184_v59 = vadd.f32 %v3347_v54, %v3283_v51  ;;  %v3350_v60 = vadd.f32 %v3349_v58, %v3348_v55 }
 0x138   : > { %v4186_v61 = vadd.f32 %v3350_v60, %v3286_v57 }
 0x139   : > { %v3287_v62 = vpop.f32.mrb[20].mxu0 }
 0x13a   : > { %v3351_v63 = vpop.f32.mrb[20].mxu1  ;;  %v3288_v0 = vpop.f32.mrb[21].mxu0 }
 0x13b   : > { %v3289_v1 = vadd.f32 %v3288_v0, %v3287_v62  ;;  %v3352_v2 = vpop.f32.mrb[21].mxu1  ;;  %v3290_v4 = vpop.f32.mrb[22].mxu0 }
 0x13c   : > { %v3353_v6 = vadd.f32 %v3352_v2, %v3351_v63  ;;  %v3354_v7 = vpop.f32.mrb[22].mxu1  ;;  %v3291_v8 = vpop.f32.mrb[23].mxu0 }
 0x13d   : > { %v3292_v9 = vadd.f32 %v3291_v8, %v3290_v4  ;;  %v3355_v10 = vpop.f32.mrb[23].mxu1 }
 0x13e   : > { %v4188_v11 = vadd.f32 %v3353_v6, %v3289_v1  ;;  %v3356_v12 = vadd.f32 %v3355_v10, %v3354_v7 }
 0x140   : > { %v4190_v13 = vadd.f32 %v3356_v12, %v3292_v9 }
 0x141   : > { %v3293_v14 = vpop.f32.mrb[24].mxu0 }
 0x142   : > { %v3357_v15 = vpop.f32.mrb[24].mxu1  ;;  %v3294_v16 = vpop.f32.mrb[25].mxu0 }
 0x143   : > { %v3295_v18 = vadd.f32 %v3294_v16, %v3293_v14  ;;  %v3358_v20 = vpop.f32.mrb[25].mxu1  ;;  %v3296_v21 = vpop.f32.mrb[26].mxu0 }
 0x144   : > { %v3359_v22 = vadd.f32 %v3358_v20, %v3357_v15  ;;  %v3360_v23 = vpop.f32.mrb[26].mxu1  ;;  %v3297_v24 = vpop.f32.mrb[27].mxu0 }
 0x145   : > { %v3298_v25 = vadd.f32 %v3297_v24, %v3296_v21  ;;  %v3361_v26 = vpop.f32.mrb[27].mxu1 }
 0x146   : > { %v1101_v27 = vadd.f32 %v3359_v22, %v3295_v18  ;;  %v3362_v28 = vadd.f32 %v3361_v26, %v3360_v23  ;;  %v538_v23 = vld [vmem:[#allocation2 + $0x10] sm:$0xff] }
 0x148   : > { %v1104_v29 = vadd.f32 %v3362_v28, %v3298_v25  ;;  %v536_v28 = vld [vmem:[#allocation2] sm:$0xff] }
 0x149   : > { %v3299_v30 = vpop.f32.mrb[28].mxu0 }
 0x14a   : > { %v3363_v32 = vpop.f32.mrb[28].mxu1  ;;  %v3300_v34 = vpop.f32.mrb[29].mxu0 }
 0x14b   : > { %v3301_v35 = vadd.f32 %v3300_v34, %v3299_v30  ;;  %v3364_v36 = vpop.f32.mrb[29].mxu1  ;;  %v3302_v37 = vpop.f32.mrb[30].mxu0  ;;  %v539_v34 = vld [vmem:[#allocation2 + $0x18] sm:$0xff] }
 0x14c   : > { %v3365_v38 = vadd.f32 %v3364_v36, %v3363_v32  ;;  %v3366_v39 = vpop.f32.mrb[30].mxu1  ;;  %v3303_v40 = vpop.f32.mrb[31].mxu0 }
 0x14d   : > { %v3304_v41 = vadd.f32 %v3303_v40, %v3302_v37  ;;  %v3367_v42 = vpop.f32.mrb[31].mxu1 }
 0x14e   : > { %v1109_v43 = vadd.f32 %v3365_v38, %v3301_v35  ;;  %v3368_v44 = vadd.f32 %v3367_v42, %v3366_v39 }
 0x150   : > { %v1112_v46 = vadd.f32 %v3368_v44, %v3304_v41 }
 0x151   : > { %v3385_v48 = vpop.f32.mrb[32].mxu0 }
 0x152   : > { %v3421_v49 = vpop.f32.mrb[32].mxu1  ;;  %v3386_v50 = vpop.f32.mrb[33].mxu0 }
 0x153   : > { %v3387_v51 = vadd.f32 %v3386_v50, %v3385_v48  ;;  %v3422_v52 = vpop.f32.mrb[33].mxu1  ;;  %v3388_v53 = vpop.f32.mrb[34].mxu0 }
 0x154   : > { %v3423_v54 = vadd.f32 %v3422_v52, %v3421_v49  ;;  %v3424_v55 = vpop.f32.mrb[34].mxu1  ;;  %v3389_v56 = vpop.f32.mrb[35].mxu0  ;;  %v540_v52 = vld [vmem:[#allocation2 + $0x20] sm:$0xff] }
 0x155   : > { %v3390_v57 = vadd.f32 %v3389_v56, %v3388_v53  ;;  %v3425_v58 = vpop.f32.mrb[35].mxu1  ;;  %v1150_v60 = vadd.f32 %v3387_v51, %v4168_v3 }
 0x156   : > { %v3426_v62 = vadd.f32 %v3425_v58, %v3424_v55  ;;  %v4193_v63 = vadd.f32 %v3423_v54, %v1101_v27  ;;  %v541_v58 = vld [vmem:[#allocation2 + $0x28] sm:$0xff] }
 0x157   : > { %v1153_v0 = vadd.f32 %v3390_v57, %v4170_v5 }
 0x158   : > { %v4196_v1 = vadd.f32 %v3426_v62, %v1104_v29  ;;  %v542_v62 = vld [vmem:[#allocation2 + $0x30] sm:$0xff] }
 0x159   : > { %v3391_v2 = vpop.f32.mrb[36].mxu0 }
 0x15a   : > { %v3427_v4 = vpop.f32.mrb[36].mxu1  ;;  %v3392_v6 = vpop.f32.mrb[37].mxu0 }
 0x15b   : > { %v3393_v7 = vadd.f32 %v3392_v6, %v3391_v2  ;;  %v3428_v8 = vpop.f32.mrb[37].mxu1  ;;  %v3394_v9 = vpop.f32.mrb[38].mxu0 }
 0x15c   : > { %v3429_v10 = vadd.f32 %v3428_v8, %v3427_v4  ;;  %v3430_v12 = vpop.f32.mrb[38].mxu1  ;;  %v3395_v14 = vpop.f32.mrb[39].mxu0 }
 0x15d   : > { %v3396_v15 = vadd.f32 %v3395_v14, %v3394_v9  ;;  %v3431_v16 = vpop.f32.mrb[39].mxu1  ;;  %v1158_v3 = vadd.f32 %v3393_v7, %v4172_v17  ;;  %v543_v7 = vld [vmem:[#allocation2 + $0x38] sm:$0xff] }
 0x15e   : > { %v3432_v18 = vadd.f32 %v3431_v16, %v3430_v12  ;;  %v4199_v20 = vadd.f32 %v3429_v10, %v1109_v43 }
 0x15f   : > { %v1161_v5 = vadd.f32 %v3396_v15, %v4174_v19  ;;  %v537_v19 = vld [vmem:[#allocation2 + $0x8] sm:$0xff] }
 0x160   : > { %v4202_v21 = vadd.f32 %v3432_v18, %v1112_v46 }
 0x161   : > { %v3397_v22 = vpop.f32.mrb[40].mxu0 }
 0x162   : > { %v3600_v24 = vpop.f32.mrb[40].mxu1  ;;  %v3398_v25 = vpop.f32.mrb[41].mxu0 }
 0x163   : > { %v1255_v26 = vadd.f32 %v3600_v24, %v1158_v3  ;;  %v3399_v27 = vadd.f32 %v3398_v25, %v3397_v22  ;;  %v1246_v29 = vpop.f32.mrb[41].mxu1  ;;  %v3400_v30 = vpop.f32.mrb[42].mxu0  ;;  %v544_v25 = vld [vmem:[#allocation2 + $0x40] sm:$0xff] }
 0x164   : > { %v1247_v32 = vadd.f32 %v1246_v29, %v1150_v60  ;;  %v3601_v17 = vpop.f32.mrb[42].mxu1  ;;  %v3401_v35 = vpop.f32.mrb[43].mxu0 }
 0x165   : > { %v1311_v36 = vadd.f32 %v1255_v26, %v538_v23  ;;  %v1258_v37 = vadd.f32 %v3601_v17, %v1161_v5  ;;  %v3402_v38 = vadd.f32 %v3401_v35, %v3400_v30  ;;  %v1249_v39 = vpop.f32.mrb[43].mxu1  ;;  %v1166_v40 = vadd.f32 %v3399_v27, %v4176_v31 }
 0x166   : > { %v1309_v41 = vadd.f32 %v1247_v32, %v536_v28  ;;  %v1250_v42 = vadd.f32 %v1249_v39, %v1153_v0  ;;  %v545_v28 = vld [vmem:[#allocation2 + $0x48] sm:$0xff] }
 0x167   : > { %1328 = vst.msk [vmem:[#allocation2 + $0x10] sm:$0xff] %vm1325_vm2, %v1311_v36  ;;  %v1312_v43 = vadd.f32 %v1258_v37, %v539_v34  ;;  %v1169_v44 = vadd.f32 %v3402_v38, %v4178_v33  ;;  %v550_v34 = vld [vmem:[#allocation2 + $0x70] sm:$0xff] }
 0x168   : > { %1326 = vst.msk [vmem:[#allocation2] sm:$0xff] %vm1325_vm2, %v1309_v41  ;;  %v1310_v46 = vadd.f32 %v1250_v42, %v537_v19  ;;  %v548_v19 = vld [vmem:[#allocation2 + $0x60] sm:$0xff]  ;;  %v551_v41 = vld [vmem:[#allocation2 + $0x78] sm:$0xff] }
 0x169   : > { %1329 = vst.msk [vmem:[#allocation2 + $0x18] sm:$0xff] %vm1325_vm2, %v1312_v43  ;;  %v3403_v48 = vpop.f32.mrb[44].mxu0 }
 0x16a   : > { %1327 = vst.msk [vmem:[#allocation2 + $0x8] sm:$0xff] %vm1325_vm2, %v1310_v46  ;;  %v3604_v49 = vpop.f32.mrb[44].mxu1  ;;  %v3404_v50 = vpop.f32.mrb[45].mxu0 }
 0x16b   : > { %v3405_v51 = vadd.f32 %v3404_v50, %v3403_v48  ;;  %v1262_v31 = vpop.f32.mrb[45].mxu1  ;;  %v3406_v53 = vpop.f32.mrb[46].mxu0 }
 0x16c   : > { %v1263_v54 = vadd.f32 %v1262_v31, %v1166_v40  ;;  %v3605_v55 = vpop.f32.mrb[46].mxu1  ;;  %v3407_v56 = vpop.f32.mrb[47].mxu0 }
 0x16d   : > { %v1174_v57 = vadd.f32 %v3405_v51, %v4180_v45  ;;  %v3408_v33 = vadd.f32 %v3407_v56, %v3406_v53  ;;  %v1265_v60 = vpop.f32.mrb[47].mxu1 }
 0x16e   : > { %v1313_v0 = vadd.f32 %v1263_v54, %v540_v52  ;;  %v1266_v2 = vadd.f32 %v1265_v60, %v1169_v44  ;;  %v547_v54 = vld [vmem:[#allocation2 + $0x58] sm:$0xff] }
 0x16f   : > { %v1271_v4 = vadd.f32 %v3604_v49, %v1174_v57  ;;  %v1177_v6 = vadd.f32 %v3408_v33, %v4182_v47  ;;  %v549_v49 = vld [vmem:[#allocation2 + $0x68] sm:$0xff] }
 0x170   : > { %1330 = vst.msk [vmem:[#allocation2 + $0x20] sm:$0xff] %vm1325_vm2, %v1313_v0  ;;  %v1314_v8 = vadd.f32 %v1266_v2, %v541_v58  ;;  %v4237_v57 = vld [vmem:[#allocation2 + $0x18] sm:$0xff] (!%p3148_p6)  ;;  %v3926_v2 = vmov (!%p3148_p6), 0  }
 0x171   : > { %v1315_v9 = vadd.f32 %v1271_v4, %v542_v62  ;;  %v1274_v10 = vadd.f32 %v3605_v55, %v1177_v6  ;;  %v3409_v12 = vpop.f32.mrb[48].mxu0  ;;  %v4243_v60 = vld [vmem:[#allocation2 + $0x8] sm:$0xff] (!%p3148_p6)  ;;  %3794 = vset.pattern.permute.xlu1 (!%p3148_p6), %v3926_v2  ;;  %2158 = vst [vmem:[#allocation3] sm:$0xff] (!%p3148_p6), %v3926_v2  ;;  %2159 = vst [vmem:[#allocation3 + $0x8] sm:$0xff] (!%p3148_p6), %v3926_v2  ;;  %3793 = vset.pattern.permute.xlu0 (!%p3148_p6), %v3926_v2 }
 0x172   : > { %1331 = vst.msk [vmem:[#allocation2 + $0x28] sm:$0xff] %vm1325_vm2, %v1314_v8  ;;  %v3410_v14 = vpop.f32.mrb[49].mxu0  ;;  %v3608_v45 = vpop.f32.mrb[48].mxu1  ;;  %2160 = vst [vmem:[#allocation3 + $0x10] sm:$0xff] (!%p3148_p6), %v3926_v2  ;;  %v1371_v8 = vsel (!%p3148_p6), %vm1325_vm2, %v4237_v57, 0.0 }
 0x173   : > { %1332 = vst.msk [vmem:[#allocation2 + $0x30] sm:$0xff] %vm1325_vm2, %v1315_v9  ;;  %v1316_v15 = vadd.f32 %v1274_v10, %v543_v7  ;;  %v3411_v16 = vadd.f32 %v3410_v14, %v3409_v12  ;;  %v3412_v3 = vpop.f32.mrb[50].mxu0  ;;  %v1278_v18 = vpop.f32.mrb[49].mxu1  ;;  %2161 = vst [vmem:[#allocation3 + $0x18] sm:$0xff] (!%p3148_p6), %v3926_v2  ;;  %v1365_v9 = vsel (!%p3148_p6), %vm1325_vm2, %v4243_v60, 0.0 }
 0x174   : > { %v3413_v5 = vpop.f32.mrb[51].mxu0  ;;  %v3609_v22 = vpop.f32.mrb[50].mxu1  ;;  %2162 = vst [vmem:[#allocation3 + $0x20] sm:$0xff] (!%p3148_p6), %v3926_v2  ;;  %2163 = vst [vmem:[#allocation3 + $0x28] sm:$0xff] (!%p3148_p6), %v3926_v2 }
 0x175   : > { %1333 = vst.msk [vmem:[#allocation2 + $0x38] sm:$0xff] %vm1325_vm2, %v1316_v15  ;;  %v3414_v47 = vadd.f32 %v3413_v5, %v3412_v3  ;;  %v1182_v23 = vadd.f32 %v3411_v16, %v4184_v59  ;;  %v1281_v24 = vpop.f32.mrb[51].mxu1  ;;  %2164 = vst [vmem:[#allocation3 + $0x30] sm:$0xff] (!%p3148_p6), %v3926_v2 }
 0x176   : > { %2165 = vst [vmem:[#allocation3 + $0x38] sm:$0xff] (!%p3148_p6), %v3926_v2  ;;  %2166 = vst [vmem:[#allocation3 + $0x40] sm:$0xff] (!%p3148_p6), %v3926_v2 }
 0x177   : > { %v1279_v26 = vadd.f32 %v1278_v18, %v1182_v23  ;;  %v1185_v27 = vadd.f32 %v3414_v47, %v4186_v61  ;;  %v4247_v0 = vld [vmem:[#allocation2 + $0x20] sm:$0xff] (!%p3148_p6)  ;;  %2167 = vst [vmem:[#allocation3 + $0x48] sm:$0xff] (!%p3148_p6), %v3926_v2  ;;  %2168 = vst [vmem:[#allocation3 + $0x50] sm:$0xff] (!%p3148_p6), %v3926_v2 }
 0x178   : > { %2169 = vst [vmem:[#allocation3 + $0x58] sm:$0xff] (!%p3148_p6), %v3926_v2  ;;  %2170 = vst [vmem:[#allocation3 + $0x60] sm:$0xff] (!%p3148_p6), %v3926_v2  ;;  %v1374_v15 = vsel (!%p3148_p6), %vm1325_vm2, %v4247_v0, 0.0 }
 0x179   : > { %v1317_v29 = vadd.f32 %v1279_v26, %v544_v25  ;;  %v1282_v30 = vadd.f32 %v1281_v24, %v1185_v27  ;;  %v3415_v32 = vpop.f32.mrb[52].mxu0  ;;  %v4245_v62 = vld [vmem:[#allocation2 + $0x28] sm:$0xff] (!%p3148_p6)  ;;  %2171 = vst [vmem:[#allocation3 + $0x68] sm:$0xff] (!%p3148_p6), %v3926_v2  ;;  %2172 = vst [vmem:[#allocation3 + $0x70] sm:$0xff] (!%p3148_p6), %v3926_v2 }
 0x17a   : > { %v3612_v17 = vpop.f32.mrb[52].mxu1  ;;  %v3416_v35 = vpop.f32.mrb[53].mxu0  ;;  %2173 = vst [vmem:[#allocation3 + $0x78] sm:$0xff] (!%p3148_p6), %v3926_v2  ;;  %2174 = vst [vmem:[#allocation3 + $0x80] sm:$0xff] (!%p3148_p6), %v3926_v2  ;;  %v4251_v6 = vld [vmem:[#allocation2 + $0x30] sm:$0xff] (!%p3148_p6)  ;;  %v1377_v10 = vsel (!%p3148_p6), %vm1325_vm2, %v4245_v62, 0.0 }
 0x17b   : > { %1334 = vst.msk [vmem:[#allocation2 + $0x40] sm:$0xff] %vm1325_vm2, %v1317_v29  ;;  %v1318_v36 = vadd.f32 %v1282_v30, %v545_v28  ;;  %v1303_v37 = vadd.f32 %v3612_v17, %v4199_v20  ;;  %v3417_v38 = vadd.f32 %v3416_v35, %v3415_v32  ;;  %v1294_v59 = vpop.f32.mrb[53].mxu1  ;;  %v3418_v39 = vpop.f32.mrb[54].mxu0  ;;  %v546_v20 = vld [vmem:[#allocation2 + $0x50] sm:$0xff]  ;;  %2175 = vst [vmem:[#allocation3 + $0x88] sm:$0xff] (!%p3148_p6), %v3926_v2  ;;  %v1380_v3 = vsel (!%p3148_p6), %vm1325_vm2, %v4251_v6, 0.0 }
 0x17c   : > { %v1295_v40 = vadd.f32 %v1294_v59, %v4193_v63  ;;  %v3613_v61 = vpop.f32.mrb[54].mxu1  ;;  %v3419_v42 = vpop.f32.mrb[55].mxu0  ;;  %v4249_v4 = vld [vmem:[#allocation2 + $0x38] sm:$0xff] (!%p3148_p6)  ;;  %v1572_v32 = vld [vmem:[%s4832_s2 + $0x8] sm:$0xff] (!%p3148_p6)  ;;  %v1571_v17 = vld [vmem:[%s4832_s2] sm:$0xff] (!%p3148_p6) }
 0x17d   : > { %1335 = vst.msk [vmem:[#allocation2 + $0x48] sm:$0xff] %vm1325_vm2, %v1318_v36  ;;  %v1323_v43 = vadd.f32 %v1303_v37, %v550_v34  ;;  %v1190_v44 = vadd.f32 %v3417_v38, %v4188_v11  ;;  %v1306_v46 = vadd.f32 %v3613_v61, %v4202_v21  ;;  %v3420_v48 = vadd.f32 %v3419_v42, %v3418_v39  ;;  %v1297_v50 = vpop.f32.mrb[55].mxu1  ;;  %v1683_v34 = vld [vmem:[%s4833_s3] sm:$0xff] (!%p3148_p6)  ;;  %v1684_v35 = vld [vmem:[%s4833_s3 + $0x8] sm:$0xff] (!%p3148_p6)  ;;  %v1573_v36 = vld [vmem:[%s4832_s2 + $0x10] sm:$0xff] (!%p3148_p6) }
 0x17e   : > { %v1321_v51 = vadd.f32 %v1295_v40, %v548_v19  ;;  %v1298_v52 = vadd.f32 %v1297_v50, %v4196_v1  ;;  %v4233_v1 = vld [vmem:[#allocation2 + $0x10] sm:$0xff] (!%p3148_p6)  ;;  %v1383_v16 = vsel (!%p3148_p6), %vm1325_vm2, %v4249_v4, 0.0 }
 0x17f   : > { %1340 = vst.msk [vmem:[#allocation2 + $0x70] sm:$0xff] %vm1325_vm2, %v1323_v43  ;;  %v1287_v63 = vadd.f32 %v3608_v45, %v1190_v44  ;;  %v1324_v31 = vadd.f32 %v1306_v46, %v551_v41  ;;  %v1193_v53 = vadd.f32 %v3420_v48, %v4190_v13  ;;  %1345 = sbr.rel (%p3148_p6) target bundleno = 1326 (0x52e), region = 52  ;;  %v4235_v13 = vld [vmem:[#allocation2] sm:$0xff] (!%p3148_p6)  ;;  %v1368_v33 = vsel (!%p3148_p6), %vm1325_vm2, %v4233_v1, 0.0 }
 0x180   : > { %1338 = vst.msk [vmem:[#allocation2 + $0x60] sm:$0xff] %vm1325_vm2, %v1321_v51  ;;  %v1322_v55 = vadd.f32 %v1298_v52, %v549_v49  ;;  %v1362_v58 = vsel (!%p3148_p6), %vm1325_vm2, %v4235_v13, 0.0  ;;  %1369 = vadd.xlane.f32.xlu1 (!%p3148_p6), %v1368_v33 }
 0x181   : > { %v1319_v11 = vadd.f32 %v1287_v63, %v546_v20  ;;  %1341 = vst.msk [vmem:[#allocation2 + $0x78] sm:$0xff] %vm1325_vm2, %v1324_v31  ;;  %v1290_v21 = vadd.f32 %v3609_v22, %v1193_v53  ;;  %1363 = vadd.xlane.f32.xlu0 (!%p3148_p6), %v1362_v58 }
 0x182   : > { %1339 = vst.msk [vmem:[#allocation2 + $0x68] sm:$0xff] %vm1325_vm2, %v1322_v55  ;;  %v4261_v12 = vld [vmem:[#allocation2 + $0x40] sm:$0xff] (!%p3148_p6) }
 0x183   : > { %1336 = vst.msk [vmem:[#allocation2 + $0x50] sm:$0xff] %vm1325_vm2, %v1319_v11  ;;  %v1320_v56 = vadd.f32 %v1290_v21, %v547_v54  ;;  %v1386_v23 = vsel (!%p3148_p6), %vm1325_vm2, %v4261_v12, 0.0 }
 0x184   : > { %v4253_v7 = vld [vmem:[#allocation2 + $0x48] sm:$0xff] (!%p3148_p6)  ;;  %1372 = vadd.xlane.f32.xlu1 (!%p3148_p6), %v1371_v8 }
 0x185   : > { %1337 = vst.msk [vmem:[#allocation2 + $0x58] sm:$0xff] %vm1325_vm2, %v1320_v56  ;;  %v1389_v47 = vsel (!%p3148_p6), %vm1325_vm2, %v4253_v7, 0.0  ;;  %1366 = vadd.xlane.f32.xlu0 (!%p3148_p6), %v1365_v9 }
 0x186   : > { %v4287_v26 = vld [vmem:[#allocation2 + $0x70] sm:$0xff] }
 0x187   : > { %v4275_v5 = vld [vmem:[#allocation2 + $0x60] sm:$0xff]  ;;  %v1404_v30 = vsel %vm1325_vm2, %v4287_v26, 0.0 }
 0x188   : > { %v4277_v22 = vld [vmem:[#allocation2 + $0x78] sm:$0xff]  ;;  %v1398_v28 = vsel %vm1325_vm2, %v4275_v5, 0.0  ;;  %1378 = vadd.xlane.f32.xlu1 %v1377_v10 }
 0x189   : > { %v4273_v18 = vld [vmem:[#allocation2 + $0x68] sm:$0xff]  ;;  %v1407_v29 = vsel %vm1325_vm2, %v4277_v22, 0.0  ;;  %1375 = vadd.xlane.f32.xlu0 %v1374_v15 }
 0x18a   : > { %v4265_v45 = vld [vmem:[#allocation2 + $0x50] sm:$0xff]  ;;  %v1401_v27 = vsel %vm1325_vm2, %v4273_v18, 0.0 }
 0x18b   : > { %v1392_v25 = vsel %vm1325_vm2, %v4265_v45, 0.0 }
 0x18c   : > { %v4263_v14 = vld [vmem:[#allocation2 + $0x58] sm:$0xff]  ;;  %1384 = vadd.xlane.f32.xlu1 %v1383_v16 }
 0x18d   : > { %v1395_v24 = vsel %vm1325_vm2, %v4263_v14, 0.0  ;;  %1381 = vadd.xlane.f32.xlu0 %v1380_v3 }
 0x190   : > { %1390 = vadd.xlane.f32.xlu1 %v1389_v47 }
 0x191   : > { %1387 = vadd.xlane.f32.xlu0 %v1386_v23 }
 0x194   : > { %1396 = vadd.xlane.f32.xlu1 %v1395_v24 }
 0x195   : > { %1393 = vadd.xlane.f32.xlu0 %v1392_v25 }
 0x198   : > { %1402 = vadd.xlane.f32.xlu1 %v1401_v27 }
 0x199   : > { %1399 = vadd.xlane.f32.xlu0 %v1398_v28 }
 0x19c   : > { %1408 = vadd.xlane.f32.xlu1 %v1407_v29 }
 0x19d   : > { %1405 = vadd.xlane.f32.xlu0 %v1404_v30 }
 0x1ad   : > { %1594 = vperm.xlu1 %3794, %v1572_v32  }
 0x1b1   : > { %1701 = vperm.xlu1 %3794, %v1683_v34  }
 0x1b3   : > { %1589 = vperm.xlu0 %3793, %v1571_v17  }
 0x1b5   : > { %1706 = vperm.xlu1 %3794, %v1684_v35  }
 0x1b9   : > { %1599 = vperm.xlu1 %3794, %v1573_v36  }
 0x20d   : > { %v1370_v37 = vpop.xlane.xlu1 %1369 }
 0x20e   : > { %v1364_v38 = vpop.xlane.xlu0 %1363  ;;  %v1413_v19 = vmul.f32 0.020408163, %v1370_v37 }
 0x20f   : > { %v1411_v59 = vmul.f32 0.020408163, %v1364_v38 }
 0x210   : > { %v4313_v39 = vsub.f32 %v4233_v1, %v1413_v19 }
 0x211   : > { %v4316_v40 = vsub.f32 %v4235_v13, %v1411_v59  ;;  %v1373_v41 = vpop.xlane.xlu1 %1372 }
 0x212   : > { %v1367_v61 = vpop.xlane.xlu0 %1366  ;;  %v1414_v42 = vmul.f32 0.020408163, %v1373_v41  ;;  %v1445_v46 = vmul.f32 %v4313_v39, %v4313_v39 }
 0x213   : > { %v1412_v43 = vmul.f32 0.020408163, %v1367_v61  ;;  %v1443_v44 = vmul.f32 %v4316_v40, %v4316_v40 }
 0x214   : > { %v4323_v48 = vsub.f32 %v4237_v57, %v1414_v42  ;;  %v1465_v52 = vsel %vm1325_vm2, %v1445_v46, 0.0 }
 0x215   : > { %v4326_v49 = vsub.f32 %v4243_v60, %v1412_v43  ;;  %v1459_v50 = vsel %vm1325_vm2, %v1443_v44, 0.0  ;;  %v1379_v20 = vpop.xlane.xlu1 %1378 }
 0x216   : > { %1460 = vadd.xlane.f32.xlu0 %v1459_v50  ;;  %v1376_v51 = vpop.xlane.xlu0 %1375  ;;  %v1416_v63 = vmul.f32 0.020408163, %v1379_v20  ;;  %v1446_v54 = vmul.f32 %v4323_v48, %v4323_v48 }
 0x217   : > { %v1415_v31 = vmul.f32 0.020408163, %v1376_v51  ;;  %v1444_v53 = vmul.f32 %v4326_v49, %v4326_v49 }
 0x218   : > { %v4335_v55 = vsub.f32 %v4245_v62, %v1416_v63  ;;  %v1468_v13 = vsel %vm1325_vm2, %v1446_v54, 0.0  ;;  %v1574_v54 = vld [vmem:[%s4832_s2 + $0x18] sm:$0xff] }
 0x219   : > { %v4338_v11 = vsub.f32 %v4247_v0, %v1415_v31  ;;  %v1462_v21 = vsel %vm1325_vm2, %v1444_v53, 0.0  ;;  %v1385_v56 = vpop.xlane.xlu1 %1384 }
 0x21a   : > { %1466 = vadd.xlane.f32.xlu0 %v1465_v52  ;;  %1463 = vadd.xlane.f32.xlu1 %v1462_v21  ;;  %v1382_v1 = vpop.xlane.xlu0 %1381  ;;  %v1418_v57 = vmul.f32 0.020408163, %v1385_v56  ;;  %v1448_v60 = vmul.f32 %v4335_v55, %v4335_v55  ;;  %v1686_v21 = vld [vmem:[%s4833_s3 + $0x18] sm:$0xff]  ;;  %v1688_v56 = vld [vmem:[%s4833_s3 + $0x28] sm:$0xff] }
 0x21b   : > { %v1417_v33 = vmul.f32 0.020408163, %v1382_v1  ;;  %v1447_v58 = vmul.f32 %v4338_v11, %v4338_v11  ;;  %v1575_v1 = vld [vmem:[%s4832_s2 + $0x20] sm:$0xff] }
 0x21c   : > { %v4347_v62 = vsub.f32 %v4249_v4, %v1418_v57  ;;  %v1474_v10 = vsel %vm1325_vm2, %v1448_v60, 0.0  ;;  %v1576_v57 = vld [vmem:[%s4832_s2 + $0x28] sm:$0xff] }
 0x21d   : > { %v4350_v0 = vsub.f32 %v4251_v6, %v1417_v33  ;;  %v1471_v2 = vsel %vm1325_vm2, %v1447_v58, 0.0  ;;  %v1391_v8 = vpop.xlane.xlu1 %1390  ;;  %v1690_v33 = vld [vmem:[%s4833_s3 + $0x38] sm:$0xff]  ;;  %v1687_v58 = vld [vmem:[%s4833_s3 + $0x20] sm:$0xff]  ;;  %v1580_v60 = vld [vmem:[%s4832_s2 + $0x48] sm:$0xff] }
 0x21e   : > { %1469 = vadd.xlane.f32.xlu1 %v1468_v13  ;;  %1472 = vadd.xlane.f32.xlu0 %v1471_v2  ;;  %v1388_v9 = vpop.xlane.xlu0 %1387  ;;  %v1420_v15 = vmul.f32 0.020408163, %v1391_v8  ;;  %v1450_v4 = vmul.f32 %v4347_v62, %v4347_v62  ;;  %v1578_v13 = vld [vmem:[%s4832_s2 + $0x38] sm:$0xff]  ;;  %v1577_v2 = vld [vmem:[%s4832_s2 + $0x30] sm:$0xff]  ;;  %v1692_v8 = vld [vmem:[%s4833_s3 + $0x48] sm:$0xff] }
 0x21f   : > { %v1419_v16 = vmul.f32 0.020408163, %v1388_v9  ;;  %v1449_v3 = vmul.f32 %v4350_v0, %v4350_v0  ;;  %v1689_v9 = vld [vmem:[%s4833_s3 + $0x30] sm:$0xff] }
 0x220   : > { %v4359_v47 = vsub.f32 %v4253_v7, %v1420_v15  ;;  %v1480_v27 = vsel %vm1325_vm2, %v1450_v4, 0.0  ;;  %v1579_v15 = vld [vmem:[%s4832_s2 + $0x40] sm:$0xff]  ;;  %v1584_v4 = vld [vmem:[%s4832_s2 + $0x68] sm:$0xff] }
 0x221   : > { %v4362_v6 = vsub.f32 %v4261_v12, %v1419_v16  ;;  %v1477_v23 = vsel %vm1325_vm2, %v1449_v3, 0.0  ;;  %v1397_v24 = vpop.xlane.xlu1 %1396  ;;  %v1694_v16 = vld [vmem:[%s4833_s3 + $0x58] sm:$0xff]  ;;  %v1691_v3 = vld [vmem:[%s4833_s3 + $0x40] sm:$0xff] }
 0x222   : > { %1475 = vadd.xlane.f32.xlu1 %v1474_v10  ;;  %1478 = vadd.xlane.f32.xlu0 %v1477_v23  ;;  %v1394_v25 = vpop.xlane.xlu0 %1393  ;;  %v1422_v28 = vmul.f32 0.020408163, %v1397_v24  ;;  %v1452_v7 = vmul.f32 %v4359_v47, %v4359_v47  ;;  %v1582_v10 = vld [vmem:[%s4832_s2 + $0x58] sm:$0xff]  ;;  %v1581_v23 = vld [vmem:[%s4832_s2 + $0x50] sm:$0xff]  ;;  %v1696_v24 = vld [vmem:[%s4833_s3 + $0x68] sm:$0xff] }
 0x223   : > { %v1421_v29 = vmul.f32 0.020408163, %v1394_v25  ;;  %v1451_v30 = vmul.f32 %v4362_v6, %v4362_v6  ;;  %v1693_v25 = vld [vmem:[%s4833_s3 + $0x50] sm:$0xff] }
 0x224   : > { %v4371_v32 = vsub.f32 %v4263_v14, %v1422_v28  ;;  %v1486_v36 = vsel %vm1325_vm2, %v1452_v7, 0.0  ;;  %v1583_v28 = vld [vmem:[%s4832_s2 + $0x60] sm:$0xff]  ;;  %v1585_v7 = vld [vmem:[%s4832_s2 + $0x70] sm:$0xff] }
 0x225   : > { %v4374_v12 = vsub.f32 %v4265_v45, %v1421_v29  ;;  %v1483_v34 = vsel %vm1325_vm2, %v1451_v30, 0.0  ;;  %v1403_v17 = vpop.xlane.xlu1 %1402  ;;  %v1698_v29 = vld [vmem:[%s4833_s3 + $0x78] sm:$0xff]  ;;  %v1695_v30 = vld [vmem:[%s4833_s3 + $0x60] sm:$0xff] }
 0x226   : > { %1481 = vadd.xlane.f32.xlu1 %v1480_v27  ;;  %1484 = vadd.xlane.f32.xlu0 %v1483_v34  ;;  %v1400_v35 = vpop.xlane.xlu0 %1399  ;;  %v1424_v37 = vmul.f32 0.020408163, %v1403_v17  ;;  %v1454_v14 = vmul.f32 %v4371_v32, %v4371_v32  ;;  %v1586_v27 = vld [vmem:[%s4832_s2 + $0x78] sm:$0xff]  ;;  %v1697_v34 = vld [vmem:[%s4833_s3 + $0x70] sm:$0xff]  ;;  %v3795_v17 = vld [vmem:[%s4834_s4] sm:$0xff]  }
 0x227   : > { %v1423_v38 = vmul.f32 0.020408163, %v1400_v35  ;;  %v1453_v19 = vmul.f32 %v4374_v12, %v4374_v12  ;;  %3630 = vmatprep.mubr.bf16.mxu0 %v3795_v17 }
 0x228   : > { %v4383_v59 = vsub.f32 %v4273_v18, %v1424_v37  ;;  %v1492_v42 = vsel %vm1325_vm2, %v1454_v14, 0.0 }
 0x229   : > { %v4386_v45 = vsub.f32 %v4275_v5, %v1423_v38  ;;  %v1489_v41 = vsel %vm1325_vm2, %v1453_v19, 0.0  ;;  %v1409_v61 = vpop.xlane.xlu1 %1408 }
 0x22a   : > { %1487 = vadd.xlane.f32.xlu1 %v1486_v36  ;;  %1490 = vadd.xlane.f32.xlu0 %v1489_v41  ;;  %v1406_v43 = vpop.xlane.xlu0 %1405  ;;  %v1426_v44 = vmul.f32 0.020408163, %v1409_v61  ;;  %v1456_v18 = vmul.f32 %v4383_v59, %v4383_v59 }
 0x22b   : > { %v1455_v46 = vmul.f32 %v4386_v45, %v4386_v45  ;;  %v1425_v50 = vmul.f32 0.020408163, %v1406_v43 }
 0x22c   : > { %v4395_v20 = vsub.f32 %v4277_v22, %v1426_v44  ;;  %v1498_v52 = vsel %vm1325_vm2, %v1456_v18, 0.0 }
 0x22d   : > { %v1495_v5 = vsel %vm1325_vm2, %v1455_v46, 0.0  ;;  %v4399_v51 = vsub.f32 %v4287_v26, %v1425_v50  ;;  %v1685_v26 = vld [vmem:[%s4833_s3 + $0x10] sm:$0xff]  ;;  %v1595_v35 = vpop.permute.xlu1 %1594 }
 0x22e   : > { %1493 = vadd.xlane.f32.xlu1 %v1492_v42  ;;  %1496 = vadd.xlane.f32.xlu0 %v1495_v5  ;;  %v1458_v63 = vmul.f32 %v4395_v20, %v4395_v20 }
 0x22f   : > { %v1457_v31 = vmul.f32 %v4399_v51, %v4399_v51 }
 0x230   : > { %v1504_v53 = vsel %vm1325_vm2, %v1458_v63, 0.0 }
 0x231   : > { %v1501_v22 = vsel %vm1325_vm2, %v1457_v31, 0.0  ;;  %v1702_v36 = vpop.permute.xlu1 %1701 }
 0x232   : > { %1499 = vadd.xlane.f32.xlu1 %v1498_v52  ;;  %1505 = vadd.xlane.f32.xlu0 %v1504_v53  ;;  %v1590_v38 = vpop.permute.xlu0 %1589 }
 0x235   : > { %v1707_v37 = vpop.permute.xlu1 %1706 }
 0x236   : > { %1502 = vadd.xlane.f32.xlu1 %v1501_v22 }
 0x239   : > { %v1600_v19 = vpop.permute.xlu1 %1599 }
 0x247   : > { %1711 = vperm.xlu1 %3794, %v1685_v26  }
 0x248   : > { %1604 = vperm.xlu0 %3793, %v1574_v54  }
 0x24b   : > { %1716 = vperm.xlu1 %3794, %v1686_v21  }
 0x24c   : > { %1726 = vperm.xlu0 %3793, %v1688_v56  }
 0x24f   : > { %1609 = vperm.xlu1 %3794, %v1575_v1  }
 0x250   : > { %1624 = vperm.xlu0 %3793, %v1578_v13  }
 0x253   : > { %1614 = vperm.xlu1 %3794, %v1576_v57  }
 0x254   : > { %1736 = vperm.xlu0 %3793, %v1690_v33  }
 0x257   : > { %1721 = vperm.xlu1 %3794, %v1687_v58  }
 0x258   : > { %1634 = vperm.xlu0 %3793, %v1580_v60  }
 0x25b   : > { %1619 = vperm.xlu1 %3794, %v1577_v2  }
 0x25c   : > { %1746 = vperm.xlu0 %3793, %v1692_v8  }
 0x25f   : > { %1731 = vperm.xlu1 %3794, %v1689_v9  }
 0x260   : > { %1644 = vperm.xlu0 %3793, %v1582_v10  }
 0x263   : > { %1629 = vperm.xlu1 %3794, %v1579_v15  }
 0x264   : > { %1756 = vperm.xlu0 %3793, %v1694_v16  }
 0x267   : > { %1741 = vperm.xlu1 %3794, %v1691_v3  }
 0x268   : > { %1654 = vperm.xlu0 %3793, %v1584_v4  }
 0x26b   : > { %1639 = vperm.xlu1 %3794, %v1581_v23  }
 0x26c   : > { %1766 = vperm.xlu0 %3793, %v1696_v24  }
 0x26f   : > { %1751 = vperm.xlu1 %3794, %v1693_v25  }
 0x270   : > { %1664 = vperm.xlu0 %3793, %v1586_v27  }
 0x273   : > { %1649 = vperm.xlu1 %3794, %v1583_v28  }
 0x274   : > { %1776 = vperm.xlu0 %3793, %v1698_v29  }
 0x277   : > { %1761 = vperm.xlu1 %3794, %v1695_v30  }
 0x27b   : > { %1659 = vperm.xlu1 %3794, %v1585_v7  }
 0x27f   : > { %1771 = vperm.xlu1 %3794, %v1697_v34  }
 0x2a3   : > { %v1461_v14 = vpop.xlane.xlu0 %1460 }
 0x2a4   : > { %v1507_v41 = vmul.f32 0.020408163, %v1461_v14 }
 0x2a6   : > { %v1523_v61 = vadd.f32 1e-05, %v1507_v41 }
 0x2a7   : > { %v1464_v42 = vpop.xlane.xlu1 %1463  ;;  %v1467_v43 = vpop.xlane.xlu0 %1466 }
 0x2a8   : > { %3885 = vrsqrt.f32 %v1523_v61  ;;  %v1508_v44 = vmul.f32 0.020408163, %v1464_v42  ;;  %v1509_v5 = vmul.f32 0.020408163, %v1467_v43  ;;  %v3813_v61 = vld [vmem:[%s4835_s5 + $0x40] sm:$0xff]   ;;  %v3815_v42 = vld [vmem:[%s4835_s5 + $0x48] sm:$0xff]  }
 0x2a9   : > { %3470 = vmatprep.subr.bf16.mxu1 %v3813_v61 }
 0x2aa   : > { %v1524_v46 = vadd.f32 1e-05, %v1508_v44  ;;  %v1525_v53 = vadd.f32 1e-05, %v1509_v5 }
 0x2ab   : > { %v1470_v50 = vpop.xlane.xlu1 %1469  ;;  %v1473_v18 = vpop.xlane.xlu0 %1472 }
 0x2ac   : > { %3887 = vrsqrt.f32 %v1524_v46  ;;  %v1510_v22 = vmul.f32 0.020408163, %v1470_v50  ;;  %v1511_v3 = vmul.f32 0.020408163, %v1473_v18  ;;  %v3816_v50 = vld [vmem:[%s4835_s5 + $0x8] sm:$0xff]  }
 0x2ad   : > { %3889 = vrsqrt.f32 %v1525_v53 }
 0x2ae   : > { %v1526_v13 = vadd.f32 1e-05, %v1510_v22 }
 0x2af   : > { %v1476_v52 = vpop.xlane.xlu1 %1475  ;;  %v1479_v63 = vpop.xlane.xlu0 %1478 }
 0x2b0   : > { %3891 = vrsqrt.f32 %v1526_v13  ;;  %v1512_v10 = vmul.f32 0.020408163, %v1476_v52  ;;  %v1513_v34 = vmul.f32 0.020408163, %v1479_v63  ;;  %v3817_v52 = vld [vmem:[%s4835_s5 + $0x50] sm:$0xff]  }
 0x2b2   : > { %v3886_v31 = vpop.eup %3885  ;;  %v1528_v25 = vadd.f32 1e-05, %v1512_v10  ;;  %v1529_v43 = vadd.f32 1e-05, %v1513_v34 }
 0x2b3   : > { %v1482_v26 = vpop.xlane.xlu1 %1481  ;;  %v1485_v54 = vpop.xlane.xlu0 %1484  ;;  %v1555_v21 = vmul.f32 %v3886_v31, %v4316_v40 }
 0x2b4   : > { %3893 = vrsqrt.f32 %v1528_v25  ;;  %v1514_v7 = vmul.f32 0.020408163, %v1482_v26  ;;  %v1515_v31 = vmul.f32 0.020408163, %v1485_v54 }
 0x2b5   : > { %v1667_v56 = vmul.f32 %v1590_v38, %v1555_v21 }
 0x2b6   : > { %v3888_v1 = vpop.eup %3887  ;;  %v1530_v38 = vadd.f32 1e-05, %v1514_v7 }
 0x2b7   : > { %v1488_v57 = vpop.xlane.xlu1 %1487  ;;  %v4493_v33 = vpop.xlane.xlu0 %1490  ;;  %v1556_v58 = vmul.f32 %v3888_v1, %v4326_v49  ;;  %v1779_v2 = vadd.f32 %v1702_v36, %v1667_v56  ;;  %v1527_v49 = vadd.f32 1e-05, %v1511_v3  ;;  %v3818_v1 = vld [vmem:[%s4835_s5 + $0x10] sm:$0xff]  }
 0x2b8   : > { %v3890_v24 = vpop.eup %3889  ;;  %v1517_v3 = vmul.f32 0.020408163, %v4493_v33 }
 0x2b9   : > { %v1668_v60 = vmul.f32 %v1595_v35, %v1556_v58  ;;  %v1795_v16 = vmax.f32 %v1779_v2, 0.0  ;;  %v1557_v29 = vmul.f32 %v3890_v24, %v4313_v39  ;;  %3895 = vrsqrt.f32 %v1527_v49  ;;  %v3814_v39 = vld [vmem:[%s4835_s5] sm:$0xff]  }
 0x2ba   : > { %v3892_v30 = vpop.eup %3891  ;;  %3897 = vrsqrt.f32 %v1530_v38  ;;  %3471 = vmatpush3.bf16.msra.mxu1 %v3814_v39  ;;  %v1533_v7 = vadd.f32 1e-05, %v1517_v3 }
 0x2bb   : > { %v4496_v8 = vpop.xlane.xlu1 %1493  ;;  %v1780_v9 = vadd.f32 %v1707_v37, %v1668_v60  ;;  %v4498_v15 = vpop.xlane.xlu0 %1496  ;;  %v1669_v36 = vmul.f32 %v1600_v19, %v1557_v29  ;;  %v1558_v37 = vmul.f32 %v3892_v30, %v4323_v48  ;;  %v1516_v48 = vmul.f32 0.020408163, %v1488_v57  ;;  %3472 = vmatprep.subr.bf16.mxu1 %v3815_v42 }
 0x2bc   : > { %3899 = vrsqrt.f32 %v1529_v43  ;;  %v1531_v57 = vadd.f32 1e-05, %v1515_v31 }
 0x2bd   : > { %v1796_v40 = vmax.f32 %v1780_v9, 0.0  ;;  %v1532_v56 = vadd.f32 1e-05, %v1516_v48  ;;  %v1518_v9 = vmul.f32 0.020408163, %v4496_v8 }
 0x2be   : > { %v3894_v63 = vpop.eup %3893  ;;  %3473 = vmatpush3.bf16.msra.mxu1 %v3816_v50 }
 0x2bf   : > { %v4500_v4 = vpop.xlane.xlu1 %1499  ;;  %v1811_v23 = vpack.c.bf16 %v1796_v40, %v1795_v16  ;;  %v4502_v27 = vpop.xlane.xlu0 %1505  ;;  %v1560_v13 = vmul.f32 %v3894_v63, %v4335_v55  ;;  %3474 = vmatprep.subr.bf16.mxu1 %v3817_v52  ;;  %3901 = vrsqrt.f32 %v1532_v56  ;;  %v1534_v49 = vadd.f32 1e-05, %v1518_v9 }
 0x2c0   : > { %3903 = vrsqrt.f32 %v1531_v57 }
 0x2c1   : > { %3614 = vmatprep.subr.bf16.mxu0 %v1811_v23  ;;  %3905 = vrsqrt.f32 %v1534_v49 }
 0x2c2   : > { %3615 = vmatpush3.bf16.msra.mxu0 %v1811_v23  ;;  %3475 = vmatpush3.bf16.msra.mxu1 %v3818_v1  ;;  %3907 = vrsqrt.f32 %v1533_v7 }
 0x2c3   : > { %v4504_v28 = vpop.xlane.xlu1 %1502  ;;  %v3896_v21 = vpop.eup %3895 }
 0x2c4   : > { %v1559_v54 = vmul.f32 %v3896_v21, %v4338_v11  ;;  %v3898_v40 = vpop.eup %3897 }
 0x2c5   : > { %v1562_v29 = vmul.f32 %v3898_v40, %v4347_v62 }
 0x2c6   : > { %v3900_v25 = vpop.eup %3899 }
 0x2c7   : > { %v1712_v17 = vpop.permute.xlu1 %1711  ;;  %v1605_v35 = vpop.permute.xlu0 %1604 }
 0x2c8   : > { %v1781_v14 = vadd.f32 %v1712_v17, %v1669_v36  ;;  %v1670_v41 = vmul.f32 %v1605_v35, %v1558_v37  ;;  %v1561_v36 = vmul.f32 %v3900_v25, %v4350_v0  ;;  %v1520_v37 = vmul.f32 0.020408163, %v4500_v4 }
 0x2ca   : > { %v1797_v18 = vmax.f32 %v1781_v14, 0.0  ;;  %v3902_v14 = vpop.eup %3901  ;;  %v1536_v43 = vadd.f32 1e-05, %v1520_v37 }
 0x2cb   : > { %v1717_v44 = vpop.permute.xlu1 %1716  ;;  %v1727_v19 = vpop.permute.xlu0 %1726 }
 0x2cc   : > { %v1782_v46 = vadd.f32 %v1717_v44, %v1670_v41  ;;  %v1519_v41 = vmul.f32 0.020408163, %v4498_v15  ;;  %v3904_v42 = vpop.eup %3903  ;;  %3909 = vrsqrt.f32 %v1536_v43  ;;  %v1522_v15 = vmul.f32 0.020408163, %v4502_v27 }
 0x2cd   : > { %v3906_v31 = vpop.eup %3905 }
 0x2ce   : > { %v1798_v5 = vmax.f32 %v1782_v46, 0.0  ;;  %v1535_v46 = vadd.f32 1e-05, %v1519_v41  ;;  %v1538_v21 = vadd.f32 1e-05, %v1522_v15  ;;  %v3806_v15 = vld [vmem:[%s4834_s4 + $0x58] sm:$0xff]  }
 0x2cf   : > { %v1610_v53 = vpop.permute.xlu1 %1609  ;;  %v1625_v22 = vpop.permute.xlu0 %1624 }
 0x2d0   : > { %v1812_v26 = vpack.c.bf16 %v1798_v5, %v1797_v18  ;;  %v1671_v10 = vmul.f32 %v1610_v53, %v1559_v54  ;;  %v1674_v8 = vmul.f32 %v1625_v22, %v1562_v29  ;;  %v1563_v5 = vmul.f32 %v3904_v42, %v4362_v6 }
 0x2d1   : > { %3911 = vrsqrt.f32 %v1535_v46  ;;  %v1521_v53 = vmul.f32 0.020408163, %v4504_v28  ;;  %v3800_v46 = vld [vmem:[%s4834_s4 + $0x28] sm:$0xff]  }
 0x2d2   : > { %3616 = vmatprep.subr.bf16.mxu0 %v1812_v26  ;;  %3913 = vrsqrt.f32 %v1538_v21  ;;  %v3820_v21 = vld [vmem:[%s4835_s5 + $0x18] sm:$0xff]  }
 0x2d3   : > { %v1615_v58 = vpop.permute.xlu1 %1614  ;;  %3617 = vmatpush3.bf16.msra.mxu0 %v1812_v26  ;;  %v1737_v60 = vpop.permute.xlu0 %1736  ;;  %v1537_v57 = vadd.f32 1e-05, %v1521_v53  ;;  %v3810_v53 = vld [vmem:[%s4834_s4 + $0x78] sm:$0xff]  }
 0x2d4   : > { %v1672_v2 = vmul.f32 %v1615_v58, %v1560_v13  ;;  %v1786_v33 = vadd.f32 %v1737_v60, %v1674_v8  ;;  %v3908_v26 = vpop.eup %3907  ;;  %v1566_v13 = vmul.f32 %v3906_v31, %v4371_v32  ;;  %v3809_v31 = vld [vmem:[%s4834_s4 + $0x70] sm:$0xff]  }
 0x2d5   : > { %v1565_v54 = vmul.f32 %v3908_v26, %v4374_v12  ;;  %3915 = vrsqrt.f32 %v1537_v57  ;;  %v3819_v26 = vld [vmem:[%s4835_s5 + $0x58] sm:$0xff]   ;;  %v3825_v57 = vld [vmem:[%s4835_s5 + $0x70] sm:$0xff]  }
 0x2d6   : > { %v1784_v16 = vadd.f32 %v1727_v19, %v1672_v2  ;;  %v1802_v44 = vmax.f32 %v1786_v33, 0.0  ;;  %v1564_v19 = vmul.f32 %v3902_v14, %v4359_v47  ;;  %v3910_v28 = vpop.eup %3909  ;;  %3476 = vmatprep.subr.bf16.mxu1 %v3819_v26 }
 0x2d7   : > { %v1722_v23 = vpop.permute.xlu1 %1721  ;;  %v1635_v55 = vpop.permute.xlu0 %1634  ;;  %v1568_v32 = vmul.f32 %v3910_v28, %v4383_v59  ;;  %3477 = vmatpush3.bf16.msra.mxu1 %v3820_v21  ;;  %v3842_v28 = vld [vmem:[%s4835_s5 + $0x1c8] sm:$0xff]  }
 0x2d8   : > { %v1783_v24 = vadd.f32 %v1722_v23, %v1671_v10  ;;  %v1800_v30 = vmax.f32 %v1784_v16, 0.0  ;;  %v1676_v50 = vmul.f32 %v1635_v55, %v1564_v19  ;;  %v3797_v19 = vld [vmem:[%s4834_s4 + $0x10] sm:$0xff]  }
 0x2da   : > { %v1799_v11 = vmax.f32 %v1783_v24, 0.0 }
 0x2db   : > { %v1620_v34 = vpop.permute.xlu1 %1619  ;;  %v1747_v17 = vpop.permute.xlu0 %1746 }
 0x2dc   : > { %v1813_v35 = vpack.c.bf16 %v1800_v30, %v1799_v11  ;;  %v1673_v38 = vmul.f32 %v1620_v34, %v1561_v36  ;;  %v1788_v52 = vadd.f32 %v1747_v17, %v1676_v50  ;;  %v3912_v3 = vpop.eup %3911  ;;  %v3803_v50 = vld [vmem:[%s4834_s4 + $0x40] sm:$0xff]  }
 0x2dd   : > { %v1567_v12 = vmul.f32 %v3912_v3, %v4386_v45  ;;  %v3914_v7 = vpop.eup %3913  ;;  %v3855_v3 = vld [vmem:[%s4835_s5 + $0x1d8] sm:$0xff]  }
 0x2de   : > { %3618 = vmatprep.subr.bf16.mxu0 %v1813_v35  ;;  %v1804_v1 = vmax.f32 %v1788_v52, 0.0  ;;  %v1570_v36 = vmul.f32 %v3914_v7, %v4395_v20  ;;  %v3796_v20 = vld [vmem:[%s4834_s4 + $0x8] sm:$0xff]   ;;  %v3807_v52 = vld [vmem:[%s4834_s4 + $0x60] sm:$0xff]  }
 0x2df   : > { %v1732_v62 = vpop.permute.xlu1 %1731  ;;  %3619 = vmatpush3.bf16.msra.mxu0 %v1813_v35  ;;  %v1645_v61 = vpop.permute.xlu0 %1644 }
 0x2e0   : > { %v1785_v39 = vadd.f32 %v1732_v62, %v1673_v38  ;;  %v1678_v27 = vmul.f32 %v1645_v61, %v1566_v13  ;;  %v3916_v8 = vpop.eup %3915  ;;  %v3823_v13 = vld [vmem:[%s4835_s5 + $0x68] sm:$0xff]  }
 0x2e1   : > { %v1569_v41 = vmul.f32 %v3916_v8, %v4399_v51  ;;  %v3798_v51 = vld [vmem:[%s4834_s4 + $0x18] sm:$0xff]  }
 0x2e2   : > { %v1801_v0 = vmax.f32 %v1785_v39, 0.0 }
 0x2e3   : > { %v1630_v48 = vpop.permute.xlu1 %1629  ;;  %v1757_v4 = vpop.permute.xlu0 %1756 }
 0x2e4   : > { %v1814_v18 = vpack.c.bf16 %v1802_v44, %v1801_v0  ;;  %v1675_v63 = vmul.f32 %v1630_v48, %v1563_v5  ;;  %v1790_v2 = vadd.f32 %v1757_v4, %v1678_v27  ;;  %v3799_v0 = vld [vmem:[%s4834_s4 + $0x20] sm:$0xff]   ;;  %v3801_v48 = vld [vmem:[%s4834_s4 + $0x30] sm:$0xff]   ;;  %v3802_v4 = vld [vmem:[%s4834_s4 + $0x38] sm:$0xff]  }
 0x2e5   : > { %v3805_v5 = vld [vmem:[%s4834_s4 + $0x50] sm:$0xff]   ;;  %v3827_v27 = vld [vmem:[%s4835_s5 + $0x78] sm:$0xff]  }
 0x2e6   : > { %3620 = vmatprep.subr.bf16.mxu0 %v1814_v18  ;;  %v1806_v23 = vmax.f32 %v1790_v2, 0.0  ;;  %v3835_v2 = vld [vmem:[%s4835_s5 + $0x1c0] sm:$0xff]  }
 0x2e7   : > { %v1742_v22 = vpop.permute.xlu1 %1741  ;;  %3621 = vmatpush3.bf16.msra.mxu0 %v1814_v18  ;;  %v1655_v56 = vpop.permute.xlu0 %1654  ;;  %v3804_v18 = vld [vmem:[%s4834_s4 + $0x48] sm:$0xff]  }
 0x2e8   : > { %v1787_v47 = vadd.f32 %v1742_v22, %v1675_v63  ;;  %v1680_v25 = vmul.f32 %v1655_v56, %v1568_v32  ;;  %v3808_v63 = vld [vmem:[%s4834_s4 + $0x68] sm:$0xff]   ;;  %v3811_v22 = vld [vmem:[%s4834_s4 + $0x80] sm:$0xff]  }
 0x2e9   : > { %v3821_v56 = vld [vmem:[%s4835_s5 + $0x60] sm:$0xff]  }
 0x2ea   : > { %v1803_v6 = vmax.f32 %v1787_v47, 0.0  ;;  %v3812_v47 = vld [vmem:[%s4834_s4 + $0x88] sm:$0xff]   ;;  %3478 = vmatprep.subr.bf16.mxu1 %v3821_v56  ;;  %v3861_v32 = vld [vmem:[%s4835_s5 + $0x1e0] sm:$0xff]  }
 0x2eb   : > { %v1640_v58 = vpop.permute.xlu1 %1639  ;;  %v1767_v10 = vpop.permute.xlu0 %1766 }
 0x2ec   : > { %v1815_v60 = vpack.c.bf16 %v1804_v1, %v1803_v6  ;;  %v1677_v9 = vmul.f32 %v1640_v58, %v1565_v54  ;;  %v1792_v30 = vadd.f32 %v1767_v10, %v1680_v25  ;;  %v3822_v1 = vld [vmem:[%s4835_s5 + $0x20] sm:$0xff]   ;;  %v3824_v6 = vld [vmem:[%s4835_s5 + $0x28] sm:$0xff]   ;;  %v3826_v58 = vld [vmem:[%s4835_s5 + $0x30] sm:$0xff]  }
 0x2ed   : > { %3479 = vmatpush3.bf16.msra.mxu1 %v3822_v1  ;;  %v3829_v54 = vld [vmem:[%s4835_s5 + $0xc0] sm:$0xff]   ;;  %v3844_v10 = vld [vmem:[%s4835_s5 + $0x188] sm:$0xff]  }
 0x2ee   : > { %3622 = vmatprep.subr.bf16.mxu0 %v1815_v60  ;;  %v1808_v35 = vmax.f32 %v1792_v30, 0.0  ;;  %3480 = vmatprep.subr.bf16.mxu1 %v3823_v13  ;;  %v3866_v25 = vld [vmem:[%s4835_s5 + $0x1a8] sm:$0xff]   ;;  %v3874_v30 = vld [vmem:[%s4835_s5 + $0x1b8] sm:$0xff]   ;;  %v3840_v13 = vld [vmem:[%s4835_s5 + $0xa0] sm:$0xff]  }
 0x2ef   : > { %v1752_v16 = vpop.permute.xlu1 %1751  ;;  %3623 = vmatpush3.bf16.msra.mxu0 %v1815_v60  ;;  %v1665_v29 = vpop.permute.xlu0 %1664  ;;  %v3828_v60 = vld [vmem:[%s4835_s5 + $0x38] sm:$0xff]  }
 0x2f0   : > { %v1789_v40 = vadd.f32 %v1752_v16, %v1677_v9  ;;  %v1682_v38 = vmul.f32 %v1665_v29, %v1570_v36  ;;  %v3837_v9 = vld [vmem:[%s4835_s5 + $0x180] sm:$0xff]   ;;  %v3849_v16 = vld [vmem:[%s4835_s5 + $0x1d0] sm:$0xff]   ;;  %v3873_v29 = vld [vmem:[%s4835_s5 + $0x1f8] sm:$0xff]  }
 0x2f1   : > { %3481 = vmatpush3.bf16.msra.mxu1 %v3824_v6 }
 0x2f2   : > { %v1805_v55 = vmax.f32 %v1789_v40, 0.0  ;;  %3482 = vmatprep.subr.bf16.mxu1 %v3825_v57  ;;  %v3850_v40 = vld [vmem:[%s4835_s5 + $0x190] sm:$0xff]   ;;  %v3841_v57 = vld [vmem:[%s4835_s5 + $0xe8] sm:$0xff]  }
 0x2f3   : > { %v1650_v24 = vpop.permute.xlu1 %1649  ;;  %v1777_v59 = vpop.permute.xlu0 %1776 }
 0x2f4   : > { %v1816_v49 = vpack.c.bf16 %v1806_v23, %v1805_v55  ;;  %v1679_v11 = vmul.f32 %v1650_v24, %v1567_v12  ;;  %v1794_v45 = vadd.f32 %v1777_v59, %v1682_v38  ;;  %v3856_v23 = vld [vmem:[%s4835_s5 + $0x198] sm:$0xff]   ;;  %v3862_v55 = vld [vmem:[%s4835_s5 + $0x1a0] sm:$0xff]   ;;  %v3865_v24 = vld [vmem:[%s4835_s5 + $0x1e8] sm:$0xff]  }
 0x2f5   : > { %3483 = vmatpush3.bf16.msra.mxu1 %v3826_v58  ;;  %v3870_v12 = vld [vmem:[%s4835_s5 + $0x1b0] sm:$0xff]  }
 0x2f6   : > { %3624 = vmatprep.subr.bf16.mxu0 %v1816_v49  ;;  %v1810_v42 = vmax.f32 %v1794_v45, 0.0  ;;  %3484 = vmatprep.subr.bf16.mxu1 %v3827_v27  ;;  %v3843_v27 = vld [vmem:[%s4835_s5 + $0xa8] sm:$0xff]  }
 0x2f7   : > { %v1762_v34 = vpop.permute.xlu1 %1761  ;;  %3625 = vmatpush3.bf16.msra.mxu0 %v1816_v49  ;;  %v3869_v49 = vld [vmem:[%s4835_s5 + $0x1f0] sm:$0xff]  }
 0x2f8   : > { %v1791_v17 = vadd.f32 %v1762_v34, %v1679_v11 }
 0x2f9   : > { %3485 = vmatpush3.bf16.msra.mxu1 %v3828_v60 }
 0x2fa   : > { %v1807_v37 = vmax.f32 %v1791_v17, 0.0  ;;  %3498 = vmatprep.subr.bf16.mxu1 %v3829_v54  ;;  %v3845_v54 = vld [vmem:[%s4835_s5 + $0xf0] sm:$0xff]  }
 0x2fb   : > { %v1660_v33 = vpop.permute.xlu1 %1659 }
 0x2fc   : > { %v1817_v14 = vpack.c.bf16 %v1808_v35, %v1807_v37  ;;  %v1681_v62 = vmul.f32 %v1660_v33, %v1569_v41 }
 0x2fe   : > { %3626 = vmatprep.subr.bf16.mxu0 %v1817_v14 }
 0x2ff   : > { %v1772_v61 = vpop.permute.xlu1 %1771  ;;  %3627 = vmatpush3.bf16.msra.mxu0 %v1817_v14 }
 0x300   : > { %v1793_v39 = vadd.f32 %v1772_v61, %v1681_v62 }
 0x302   : > { %v1809_v43 = vmax.f32 %v1793_v39, 0.0 }
 0x304   : > { %v1818_v44 = vpack.c.bf16 %v1810_v42, %v1809_v43  ;;  %v3830_v42 = vld [vmem:[%s4835_s5 + $0x80] sm:$0xff]  }
 0x306   : > { %3628 = vmatprep.subr.bf16.mxu0 %v1818_v44 }
 0x307   : > { %3629 = vmatpush3.bf16.msra.mxu0 %v1818_v44 }
 0x308   : > { %3554 = vmatprep.subr.bf16.mxu0 %v3835_v2 }
 0x30a   : > { %3631 = vmatmul.mubr.bf16.vlgmr.msra.gmra.mrb[0].mxu0 %v3796_v20  ;;  %v3831_v20 = vld [vmem:[%s4835_s5 + $0xc8] sm:$0xff]  }
 0x30b   : > { %3634 = vmatprep.mubr.bf16.mxu0 %v3797_v19  ;;  %3555 = vmatpush3.bf16.msra.mxu0 %v3837_v9 }
 0x30c   : > { %3556 = vmatprep.subr.bf16.mxu0 %v3842_v28 }
 0x30f   : > { %3557 = vmatpush3.bf16.msra.mxu0 %v3844_v10 }
 0x310   : > { %3558 = vmatprep.subr.bf16.mxu0 %v3849_v16  ;;  %v3846_v16 = vld [vmem:[%s4835_s5 + $0xb0] sm:$0xff]  }
 0x312   : > { %3635 = vmatmul.mubr.bf16.gmra.mrb[4].mxu0 %v3798_v51 }
 0x313   : > { %3638 = vmatprep.mubr.bf16.mxu0 %v3799_v0  ;;  %3559 = vmatpush3.bf16.msra.mxu0 %v3850_v40  ;;  %v3832_v0 = vld [vmem:[%s4835_s5 + $0x88] sm:$0xff]  }
 0x314   : > { %3560 = vmatprep.subr.bf16.mxu0 %v3855_v3  ;;  %v3847_v3 = vld [vmem:[%s4835_s5 + $0xf8] sm:$0xff]  }
 0x317   : > { %3561 = vmatpush3.bf16.msra.mxu0 %v3856_v23  ;;  %v3848_v23 = vld [vmem:[%s4835_s5 + $0xb8] sm:$0xff]  }
 0x318   : > { %3562 = vmatprep.subr.bf16.mxu0 %v3861_v32 }
 0x31a   : > { %3639 = vmatmul.mubr.bf16.gmra.mrb[8].mxu0 %v3800_v46 }
 0x31b   : > { %3642 = vmatprep.mubr.bf16.mxu0 %v3801_v48  ;;  %3563 = vmatpush3.bf16.msra.mxu0 %v3862_v55  ;;  %v3833_v48 = vld [vmem:[%s4835_s5 + $0xd0] sm:$0xff]   ;;  %v3851_v55 = vld [vmem:[%s4835_s5 + $0x140] sm:$0xff]  }
 0x31c   : > { %3564 = vmatprep.subr.bf16.mxu0 %v3865_v24 }
 0x31f   : > { %3565 = vmatpush3.bf16.msra.mxu0 %v3866_v25 }
 0x320   : > { %3566 = vmatprep.subr.bf16.mxu0 %v3869_v49 }
 0x322   : > { %3643 = vmatmul.mubr.bf16.gmra.mrb[12].mxu0 %v3802_v4 }
 0x323   : > { %3646 = vmatprep.mubr.bf16.mxu0 %v3803_v50  ;;  %3567 = vmatpush3.bf16.msra.mxu0 %v3870_v12 }
 0x324   : > { %3568 = vmatprep.subr.bf16.mxu0 %v3873_v29  ;;  %v3852_v29 = vld [vmem:[%s4835_s5 + $0x100] sm:$0xff]  }
 0x327   : > { %3569 = vmatpush3.bf16.msra.mxu0 %v3874_v30 }
 0x32a   : > { %3647 = vmatmul.mubr.bf16.gmra.mrb[16].mxu0 %v3804_v18 }
 0x32b   : > { %3650 = vmatprep.mubr.bf16.mxu0 %v3805_v5 }
 0x332   : > { %3651 = vmatmul.mubr.bf16.gmra.mrb[20].mxu0 %v3806_v15  ;;  %v3834_v15 = vld [vmem:[%s4835_s5 + $0x90] sm:$0xff]  }
 0x333   : > { %3654 = vmatprep.mubr.bf16.mxu0 %v3807_v52 }
 0x33a   : > { %3655 = vmatmul.mubr.bf16.gmra.mrb[24].mxu0 %v3808_v63  ;;  %v3836_v63 = vld [vmem:[%s4835_s5 + $0xd8] sm:$0xff]  }
 0x33b   : > { %3658 = vmatprep.mubr.bf16.mxu0 %v3809_v31 }
 0x342   : > { %3659 = vmatmul.mubr.bf16.gmra.mrb[28].mxu0 %v3810_v53  ;;  %v3838_v53 = vld [vmem:[%s4835_s5 + $0x98] sm:$0xff]  }
 0x343   : > { %3662 = vmatprep.mubr.bf16.mxu0 %v3811_v22 }
 0x34a   : > { %3663 = vmatmul.mubr.bf16.gmra.mrb[32].mxu0 %v3812_v47  ;;  %v3839_v47 = vld [vmem:[%s4835_s5 + $0xe0] sm:$0xff]  }
 0x3dd   : > { %v3632_v11 = vpop.f32.mrb[0].mxu0 }
 0x3de   : > { %v1997_v7 = vpop.f32.mrb[1].mxu0 }
 0x3df   : > { %v3633_v34 = vpop.f32.mrb[2].mxu0 }
 0x3e0   : > { %v2141_v17 = vpack.c.bf16 %v3633_v34, %v3632_v11  ;;  %v2000_v8 = vpop.f32.mrb[3].mxu0  ;;  %v3853_v11 = vld [vmem:[%s4835_s5 + $0x148] sm:$0xff]  }
 0x3e1   : > { %v2140_v35 = vpack.c.bf16 %v2000_v8, %v1997_v7 }
 0x3e2   : > { %2177 = vst.msk [vmem:[#allocation3 + $0x48] sm:$0xff] %vm1325_vm2, %v2141_v17  ;;  %v3854_v17 = vld [vmem:[%s4835_s5 + $0x108] sm:$0xff]  }
 0x3e3   : > { %2176 = vst.msk [vmem:[#allocation3] sm:$0xff] %vm1325_vm2, %v2140_v35  ;;  %v3857_v35 = vld [vmem:[%s4835_s5 + $0x150] sm:$0xff]  }
 0x3e5   : > { %v3636_v36 = vpop.f32.mrb[4].mxu0 }
 0x3e6   : > { %v2013_v37 = vpop.f32.mrb[5].mxu0 }
 0x3e7   : > { %v3637_v59 = vpop.f32.mrb[6].mxu0 }
 0x3e8   : > { %v2143_v33 = vpack.c.bf16 %v3637_v59, %v3636_v36  ;;  %v2016_v38 = vpop.f32.mrb[7].mxu0 }
 0x3e9   : > { %v2142_v14 = vpack.c.bf16 %v2016_v38, %v2013_v37  ;;  %v2203_v31 = vld [vmem:[#allocation3 + $0x48] sm:$0xff]  ;;  %v3858_v38 = vld [vmem:[%s4835_s5 + $0x110] sm:$0xff]  }
 0x3ea   : > { %2179 = vst.msk [vmem:[#allocation3 + $0x50] sm:$0xff] %vm1325_vm2, %v2143_v33  ;;  %v2194_v19 = vld [vmem:[#allocation3] sm:$0xff] }
 0x3eb   : > { %2178 = vst.msk [vmem:[#allocation3 + $0x8] sm:$0xff] %vm1325_vm2, %v2142_v14 }
 0x3ed   : > { %v3640_v41 = vpop.f32.mrb[8].mxu0 }
 0x3ee   : > { %v2029_v45 = vpop.f32.mrb[9].mxu0 }
 0x3ef   : > { %v3641_v62 = vpop.f32.mrb[10].mxu0 }
 0x3f0   : > { %v2145_v61 = vpack.c.bf16 %v3641_v62, %v3640_v41  ;;  %v2032_v39 = vpop.f32.mrb[11].mxu0  ;;  %v3859_v41 = vld [vmem:[%s4835_s5 + $0x158] sm:$0xff]  }
 0x3f1   : > { %v2144_v43 = vpack.c.bf16 %v2032_v39, %v2029_v45  ;;  %v2204_v51 = vld [vmem:[#allocation3 + $0x50] sm:$0xff] }
 0x3f2   : > { %v2195_v44 = vld [vmem:[#allocation3 + $0x8] sm:$0xff]  ;;  %2181 = vst.msk [vmem:[#allocation3 + $0x58] sm:$0xff] %vm1325_vm2, %v2145_v61  ;;  %v3860_v61 = vld [vmem:[%s4835_s5 + $0x118] sm:$0xff]  }
 0x3f3   : > { %2820 = vmatprep.mubr.bf16.mxu1 %v2195_v44  ;;  %2180 = vst.msk [vmem:[#allocation3 + $0x10] sm:$0xff] %vm1325_vm2, %v2144_v43 }
 0x3f4   : > { %2821 = vmatmul.mubr.bf16.vlgmr.msra.gmra.mrb[0].mxu1 %v2194_v19 }
 0x3f5   : > { %3499 = vmatpush3.bf16.msra.mxu1 %v3830_v42  ;;  %2828 = vmatprep.mubr.bf16.mxu1 %v2204_v51  ;;  %v3644_v46 = vpop.f32.mrb[12].mxu0  ;;  %v3863_v42 = vld [vmem:[%s4835_s5 + $0x160] sm:$0xff]  }
 0x3f6   : > { %3500 = vmatprep.subr.bf16.mxu1 %v3831_v20  ;;  %v2045_v4 = vpop.f32.mrb[13].mxu0  ;;  %v3864_v51 = vld [vmem:[%s4835_s5 + $0x120] sm:$0xff]  }
 0x3f7   : > { %v3645_v50 = vpop.f32.mrb[14].mxu0 }
 0x3f8   : > { %v2147_v18 = vpack.c.bf16 %v3645_v50, %v3644_v46  ;;  %v2048_v5 = vpop.f32.mrb[15].mxu0 }
 0x3f9   : > { %3501 = vmatpush3.bf16.msra.mxu1 %v3832_v0  ;;  %v2146_v52 = vpack.c.bf16 %v2048_v5, %v2045_v4  ;;  %v2205_v62 = vld [vmem:[#allocation3 + $0x58] sm:$0xff]  ;;  %v3871_v5 = vld [vmem:[%s4835_s5 + $0x170] sm:$0xff]  }
 0x3fa   : > { %3502 = vmatprep.subr.bf16.mxu1 %v3833_v48  ;;  %2183 = vst.msk [vmem:[#allocation3 + $0x60] sm:$0xff] %vm1325_vm2, %v2147_v18  ;;  %v2196_v7 = vld [vmem:[#allocation3 + $0x10] sm:$0xff]  ;;  %v3867_v48 = vld [vmem:[%s4835_s5 + $0x168] sm:$0xff]  }
 0x3fb   : > { %2182 = vst.msk [vmem:[#allocation3 + $0x18] sm:$0xff] %vm1325_vm2, %v2146_v52  ;;  %v3868_v18 = vld [vmem:[%s4835_s5 + $0x128] sm:$0xff]  }
 0x3fc   : > { %2829 = vmatmul.mubr.bf16.gmra.mrb[4].mxu1 %v2203_v31  ;;  %v3876_v31 = vld [vmem:[%s4835_s5 + $0x138] sm:$0xff]  }
 0x3fd   : > { %3503 = vmatpush3.bf16.msra.mxu1 %v3834_v15  ;;  %v3648_v22 = vpop.f32.mrb[16].mxu0  ;;  %v3872_v15 = vld [vmem:[%s4835_s5 + $0x130] sm:$0xff]  }
 0x3fe   : > { %3504 = vmatprep.subr.bf16.mxu1 %v3836_v63  ;;  %v2061_v26 = vpop.f32.mrb[17].mxu0  ;;  %v3875_v63 = vld [vmem:[%s4835_s5 + $0x178] sm:$0xff]  }
 0x3ff   : > { %v3649_v21 = vpop.f32.mrb[18].mxu0 }
 0x400   : > { %v2149_v56 = vpack.c.bf16 %v3649_v21, %v3648_v22  ;;  %v2064_v1 = vpop.f32.mrb[19].mxu0  ;;  %v3878_v22 = vld [vmem:[%s4835_s5 + $0x208] sm:$0xff]   ;;  %v3879_v21 = vld [vmem:[%s4835_s5 + $0x210] sm:$0xff]  }
 0x401   : > { %3505 = vmatpush3.bf16.msra.mxu1 %v3838_v53  ;;  %v2148_v6 = vpack.c.bf16 %v2064_v1, %v2061_v26  ;;  %v2206_v34 = vld [vmem:[#allocation3 + $0x60] sm:$0xff] }
 0x402   : > { %3506 = vmatprep.subr.bf16.mxu1 %v3839_v47  ;;  %v2197_v58 = vld [vmem:[#allocation3 + $0x18] sm:$0xff]  ;;  %2185 = vst.msk [vmem:[#allocation3 + $0x68] sm:$0xff] %vm1325_vm2, %v2149_v56  ;;  %v3877_v53 = vld [vmem:[%s4835_s5 + $0x200] sm:$0xff]  }
 0x403   : > { %2869 = vmatprep.mubr.bf16.mxu1 %v2197_v58  ;;  %2184 = vst.msk [vmem:[#allocation3 + $0x20] sm:$0xff] %vm1325_vm2, %v2148_v6  ;;  %v3880_v56 = vld [vmem:[%s4835_s5 + $0x218] sm:$0xff]   ;;  %v3881_v6 = vld [vmem:[%s4835_s5 + $0x220] sm:$0xff]   ;;  %v3883_v58 = vld [vmem:[%s4835_s5 + $0x230] sm:$0xff]  }
 0x405   : > { %3507 = vmatpush3.bf16.msra.mxu1 %v3840_v13  ;;  %v3652_v60 = vpop.f32.mrb[20].mxu0 }
 0x406   : > { %3508 = vmatprep.subr.bf16.mxu1 %v3841_v57  ;;  %v2077_v2 = vpop.f32.mrb[21].mxu0  ;;  %v3882_v57 = vld [vmem:[%s4835_s5 + $0x228] sm:$0xff]  }
 0x407   : > { %v3653_v9 = vpop.f32.mrb[22].mxu0 }
 0x408   : > { %v2151_v28 = vpack.c.bf16 %v3653_v9, %v3652_v60  ;;  %v2080_v10 = vpop.f32.mrb[23].mxu0 }
 0x409   : > { %3509 = vmatpush3.bf16.msra.mxu1 %v3843_v27  ;;  %v2150_v40 = vpack.c.bf16 %v2080_v10, %v2077_v2  ;;  %v2207_v13 = vld [vmem:[#allocation3 + $0x68] sm:$0xff]  ;;  %v3884_v27 = vld [vmem:[%s4835_s5 + $0x238] sm:$0xff]  }
 0x40a   : > { %3510 = vmatprep.subr.bf16.mxu1 %v3845_v54  ;;  %2187 = vst.msk [vmem:[#allocation3 + $0x70] sm:$0xff] %vm1325_vm2, %v2151_v28  ;;  %v2198_v47 = vld [vmem:[#allocation3 + $0x20] sm:$0xff] }
 0x40b   : > { %2186 = vst.msk [vmem:[#allocation3 + $0x28] sm:$0xff] %vm1325_vm2, %v2150_v40 }
 0x40d   : > { %3511 = vmatpush3.bf16.msra.mxu1 %v3846_v16  ;;  %v3656_v32 = vpop.f32.mrb[24].mxu0 }
 0x40e   : > { %3512 = vmatprep.subr.bf16.mxu1 %v3847_v3  ;;  %v2093_v24 = vpop.f32.mrb[25].mxu0 }
 0x40f   : > { %v3657_v25 = vpop.f32.mrb[26].mxu0 }
 0x410   : > { %v2153_v49 = vpack.c.bf16 %v3657_v25, %v3656_v32  ;;  %v2096_v12 = vpop.f32.mrb[27].mxu0 }
 0x411   : > { %3513 = vmatpush3.bf16.msra.mxu1 %v3848_v23  ;;  %v2152_v30 = vpack.c.bf16 %v2096_v12, %v2093_v24  ;;  %v2208_v26 = vld [vmem:[#allocation3 + $0x70] sm:$0xff] }
 0x412   : > { %3526 = vmatprep.subr.bf16.mxu1 %v3851_v55  ;;  %2189 = vst.msk [vmem:[#allocation3 + $0x78] sm:$0xff] %vm1325_vm2, %v2153_v49  ;;  %v2199_v45 = vld [vmem:[#allocation3 + $0x28] sm:$0xff] }
 0x413   : > { %2188 = vst.msk [vmem:[#allocation3 + $0x30] sm:$0xff] %vm1325_vm2, %v2152_v30 }
 0x414   : > { %2870 = vmatmul.mubr.bf16.vlgmr.msra.gmra.mrb[8].mxu1 %v2196_v7 }
 0x415   : > { %2877 = vmatprep.mubr.bf16.mxu1 %v2206_v34  ;;  %3527 = vmatpush3.bf16.msra.mxu1 %v3852_v29  ;;  %v3660_v8 = vpop.f32.mrb[28].mxu0 }
 0x416   : > { %3528 = vmatprep.subr.bf16.mxu1 %v3853_v11  ;;  %v2109_v36 = vpop.f32.mrb[29].mxu0 }
 0x417   : > { %v3661_v37 = vpop.f32.mrb[30].mxu0 }
 0x418   : > { %v2155_v59 = vpack.c.bf16 %v3661_v37, %v3660_v8  ;;  %v2112_v33 = vpop.f32.mrb[31].mxu0 }
 0x419   : > { %3529 = vmatpush3.bf16.msra.mxu1 %v3854_v17  ;;  %v2154_v14 = vpack.c.bf16 %v2112_v33, %v2109_v36  ;;  %v2209_v52 = vld [vmem:[#allocation3 + $0x78] sm:$0xff] }
 0x41a   : > { %3530 = vmatprep.subr.bf16.mxu1 %v3857_v35  ;;  %2191 = vst.msk [vmem:[#allocation3 + $0x80] sm:$0xff] %vm1325_vm2, %v2155_v59  ;;  %v2200_v0 = vld [vmem:[#allocation3 + $0x30] sm:$0xff] }
 0x41b   : > { %2190 = vst.msk [vmem:[#allocation3 + $0x38] sm:$0xff] %vm1325_vm2, %v2154_v14 }
 0x41c   : > { %2878 = vmatmul.mubr.bf16.gmra.mrb[12].mxu1 %v2205_v62 }
 0x41d   : > { %3531 = vmatpush3.bf16.msra.mxu1 %v3858_v38  ;;  %2918 = vmatprep.mubr.bf16.mxu1 %v2199_v45  ;;  %v3664_v39 = vpop.f32.mrb[32].mxu0 }
 0x41e   : > { %3532 = vmatprep.subr.bf16.mxu1 %v3859_v41  ;;  %v2125_v43 = vpop.f32.mrb[33].mxu0 }
 0x41f   : > { %v3665_v44 = vpop.f32.mrb[34].mxu0 }
 0x420   : > { %v2157_v20 = vpack.c.bf16 %v3665_v44, %v3664_v39  ;;  %v2128_v19 = vpop.f32.mrb[35].mxu0 }
 0x421   : > { %3533 = vmatpush3.bf16.msra.mxu1 %v3860_v61  ;;  %v2156_v46 = vpack.c.bf16 %v2128_v19, %v2125_v43  ;;  %v2210_v50 = vld [vmem:[#allocation3 + $0x80] sm:$0xff] }
 0x422   : > { %3534 = vmatprep.subr.bf16.mxu1 %v3863_v42  ;;  %v2201_v4 = vld [vmem:[#allocation3 + $0x38] sm:$0xff]  ;;  %2193 = vst.msk [vmem:[#allocation3 + $0x88] sm:$0xff] %vm1325_vm2, %v2157_v20 }
 0x423   : > { %2967 = vmatprep.mubr.bf16.mxu0 %v2201_v4  ;;  %2192 = vst.msk [vmem:[#allocation3 + $0x40] sm:$0xff] %vm1325_vm2, %v2156_v46 }
 0x424   : > { %2968 = vmatmul.mubr.bf16.vlgmr.msra.gmra.mrb[36].mxu0 %v2200_v0 }
 0x425   : > { %3535 = vmatpush3.bf16.msra.mxu1 %v3864_v51  ;;  %2975 = vmatprep.mubr.bf16.mxu0 %v2210_v50 }
 0x426   : > { %3536 = vmatprep.subr.bf16.mxu1 %v3867_v48 }
 0x429   : > { %3537 = vmatpush3.bf16.msra.mxu1 %v3868_v18  ;;  %v2211_v60 = vld [vmem:[#allocation3 + $0x88] sm:$0xff] }
 0x42a   : > { %3538 = vmatprep.subr.bf16.mxu1 %v3871_v5  ;;  %v2202_v1 = vld [vmem:[#allocation3 + $0x40] sm:$0xff] }
 0x42c   : > { %2976 = vmatmul.mubr.bf16.gmra.mrb[40].mxu0 %v2209_v52 }
 0x42d   : > { %3539 = vmatpush3.bf16.msra.mxu1 %v3872_v15 }
 0x42e   : > { %3540 = vmatprep.subr.bf16.mxu1 %v3875_v63 }
 0x431   : > { %3541 = vmatpush3.bf16.msra.mxu1 %v3876_v31 }
 0x432   : > { %3666 = vmatprep.subr.bf16.mxu1 %v3877_v53 }
 0x434   : > { %2919 = vmatmul.mubr.bf16.vlgmr.msra.gmra.mrb[16].mxu1 %v2198_v47 }
 0x435   : > { %2926 = vmatprep.mubr.bf16.mxu1 %v2208_v26  ;;  %3667 = vmatpush3.bf16.msra.mxu1 %v3877_v53 }
 0x436   : > { %3668 = vmatprep.subr.bf16.mxu1 %v3878_v22 }
 0x439   : > { %3669 = vmatpush3.bf16.msra.mxu1 %v3878_v22 }
 0x43a   : > { %3670 = vmatprep.subr.bf16.mxu1 %v3879_v21 }
 0x43c   : > { %2927 = vmatmul.mubr.bf16.gmra.mrb[20].mxu1 %v2207_v13 }
 0x43d   : > { %3671 = vmatpush3.bf16.msra.mxu1 %v3879_v21  ;;  %3682 = vmatprep.mubr.bf16.mxu1 %v2202_v1 }
 0x43e   : > { %3672 = vmatprep.subr.bf16.mxu1 %v3880_v56 }
 0x441   : > { %3673 = vmatpush3.bf16.msra.mxu1 %v3880_v56 }
 0x442   : > { %3674 = vmatprep.subr.bf16.mxu1 %v3881_v6 }
 0x445   : > { %3675 = vmatpush3.bf16.msra.mxu1 %v3881_v6 }
 0x446   : > { %3676 = vmatprep.subr.bf16.mxu1 %v3882_v57 }
 0x449   : > { %3677 = vmatpush3.bf16.msra.mxu1 %v3882_v57 }
 0x44a   : > { %3678 = vmatprep.subr.bf16.mxu1 %v3883_v58 }
 0x44d   : > { %3679 = vmatpush3.bf16.msra.mxu1 %v3883_v58 }
 0x44e   : > { %3680 = vmatprep.subr.bf16.mxu1 %v3884_v27 }
 0x451   : > { %3681 = vmatpush3.bf16.msra.mxu1 %v3884_v27 }
 0x454   : > { %3683 = vmatmul.mubr.bf16.vlgmr.msra.gmra.mrb[24].mxu1 %v2211_v60 }
 0x4c7   : > { %v3486_v54 = vpop.f32.mrb[0].mxu1 }
 0x4c8   : > { %v3487_v2 = vpop.f32.mrb[1].mxu1 }
 0x4c9   : > { %v3488_v9 = vadd.f32 %v3487_v2, %v3486_v54  ;;  %v3489_v28 = vpop.f32.mrb[2].mxu1 }
 0x4ca   : > { %v3490_v10 = vpop.f32.mrb[3].mxu1 }
 0x4cb   : > { %v3491_v16 = vadd.f32 %v3490_v10, %v3489_v28 }
 0x4cf   : > { %v3492_v40 = vpop.f32.mrb[4].mxu1 }
 0x4d0   : > { %v3493_v3 = vpop.f32.mrb[5].mxu1 }
 0x4d1   : > { %v3494_v23 = vadd.f32 %v3493_v3, %v3492_v40  ;;  %v3495_v32 = vpop.f32.mrb[6].mxu1 }
 0x4d2   : > { %v3496_v55 = vpop.f32.mrb[7].mxu1 }
 0x4d3   : > { %v3497_v24 = vadd.f32 %v3496_v55, %v3495_v32 }
 0x4e7   : > { %v3514_v25 = vpop.f32.mrb[8].mxu1 }
 0x4e8   : > { %v3515_v49 = vpop.f32.mrb[9].mxu1 }
 0x4e9   : > { %v3516_v12 = vadd.f32 %v3515_v49, %v3514_v25  ;;  %v3517_v29 = vpop.f32.mrb[10].mxu1 }
 0x4ea   : > { %v3518_v30 = vpop.f32.mrb[11].mxu1 }
 0x4eb   : > { %v2872_v11 = vadd.f32 %v3516_v12, %v3488_v9  ;;  %v3519_v7 = vadd.f32 %v3518_v30, %v3517_v29 }
 0x4ed   : > { %v2875_v34 = vadd.f32 %v3519_v7, %v3491_v16 }
 0x4ef   : > { %v3520_v17 = vpop.f32.mrb[12].mxu1 }
 0x4f0   : > { %v3521_v8 = vpop.f32.mrb[13].mxu1 }
 0x4f1   : > { %v3522_v35 = vadd.f32 %v3521_v8, %v3520_v17  ;;  %v3523_v36 = vpop.f32.mrb[14].mxu1 }
 0x4f2   : > { %v3524_v37 = vpop.f32.mrb[15].mxu1 }
 0x4f3   : > { %v2880_v59 = vadd.f32 %v3522_v35, %v3494_v23  ;;  %v3525_v33 = vadd.f32 %v3524_v37, %v3523_v36 }
 0x4f5   : > { %v2883_v38 = vadd.f32 %v3525_v33, %v3497_v24 }
 0x4f7   : > { %v3570_v14 = vpop.f32.mrb[36].mxu0 }
 0x4f8   : > { %v3571_v41 = vpop.f32.mrb[37].mxu0 }
 0x4f9   : > { %v3572_v45 = vadd.f32 %v3571_v41, %v3570_v14  ;;  %v3573_v62 = vpop.f32.mrb[38].mxu0 }
 0x4fa   : > { %v3574_v61 = vpop.f32.mrb[39].mxu0 }
 0x4fb   : > { %v3575_v39 = vadd.f32 %v3574_v61, %v3573_v62 }
 0x4ff   : > { %v3576_v42 = vpop.f32.mrb[40].mxu0 }
 0x500   : > { %v3577_v43 = vpop.f32.mrb[41].mxu0 }
 0x501   : > { %v3578_v44 = vadd.f32 %v3577_v43, %v3576_v42  ;;  %v3579_v20 = vpop.f32.mrb[42].mxu0 }
 0x502   : > { %v3580_v19 = vpop.f32.mrb[43].mxu0 }
 0x503   : > { %v3581_v51 = vadd.f32 %v3580_v19, %v3579_v20 }
 0x507   : > { %v3542_v0 = vpop.f32.mrb[16].mxu1 }
 0x508   : > { %v3543_v46 = vpop.f32.mrb[17].mxu1 }
 0x509   : > { %v3544_v48 = vadd.f32 %v3543_v46, %v3542_v0  ;;  %v3545_v4 = vpop.f32.mrb[18].mxu1 }
 0x50a   : > { %v3546_v50 = vpop.f32.mrb[19].mxu1 }
 0x50b   : > { %v2921_v18 = vadd.f32 %v3544_v48, %v2872_v11  ;;  %v3547_v5 = vadd.f32 %v3546_v50, %v3545_v4 }
 0x50d   : > { %v2924_v15 = vadd.f32 %v3547_v5, %v2875_v34  ;;  %v2970_v52 = vadd.f32 %v3572_v45, %v2921_v18 }
 0x50f   : > { %v3548_v63 = vpop.f32.mrb[20].mxu1  ;;  %v2973_v31 = vadd.f32 %v3575_v39, %v2924_v15 }
 0x510   : > { %v3549_v53 = vpop.f32.mrb[21].mxu1 }
 0x511   : > { %v3550_v22 = vadd.f32 %v3549_v53, %v3548_v63  ;;  %v3551_v47 = vpop.f32.mrb[22].mxu1 }
 0x512   : > { %v3552_v26 = vpop.f32.mrb[23].mxu1 }
 0x513   : > { %v2929_v21 = vadd.f32 %v3550_v22, %v2880_v59  ;;  %v3553_v56 = vadd.f32 %v3552_v26, %v3551_v47 }
 0x515   : > { %v2932_v1 = vadd.f32 %v3553_v56, %v2883_v38  ;;  %v2978_v13 = vadd.f32 %v3578_v44, %v2929_v21 }
 0x517   : > { %v2981_v6 = vadd.f32 %v3581_v51, %v2932_v1 }
 0x527   : > { %v3684_v57 = vpop.f32.mrb[24].mxu1 }
 0x528   : > { %v3027_v58 = vadd.f32 %v3684_v57, %v2978_v13  ;;  %v3018_v27 = vpop.f32.mrb[25].mxu1 }
 0x529   : > { %v3019_v60 = vadd.f32 %v3018_v27, %v2970_v52  ;;  %v3685_v54 = vpop.f32.mrb[26].mxu1 }
 0x52a   : > { %3035 = vst.msk [vmem:[%s4836_s6 + $0x10] sm:$0xff] %vm1325_vm2, %v3027_v58  ;;  %v3030_v2 = vadd.f32 %v3685_v54, %v2981_v6  ;;  %v3021_v9 = vpop.f32.mrb[27].mxu1 }
 0x52b   : > { %3033 = vst.msk [vmem:[%s4836_s6] sm:$0xff] %vm1325_vm2, %v3019_v60  ;;  %v3022_v28 = vadd.f32 %v3021_v9, %v2973_v31 }
 0x52c   : > { %3036 = vst.msk [vmem:[%s4836_s6 + $0x18] sm:$0xff] %vm1325_vm2, %v3030_v2 }
 0x52d   : > { %3034 = vst.msk [vmem:[%s4836_s6 + $0x8] sm:$0xff] %vm1325_vm2, %v3022_v28 }
 0x52e PF: > { %s16_s21 = sadd.s32 1, %s3923_s21  }
 0x52f   : > { %p13_p7 = scmp.ge.s32.totalorder %s16_s21, 4  }
 0x531   :  { %15 = sbr.rel (!%p13_p7) target bundleno = 1 (0x1), region = 81 }

</bundles_post_ra>
